<compile_context>
chip_gen: v7x
topology: tpu7x:2x2x1
jax: 0.10.0
libtpu: 0.0.40
codegen_flags: <defaults>
</compile_context>

<pallas_src>
import functools

import jax
import jax.numpy as jnp
from jax import lax
from jax.experimental import pallas as pl
from jax.experimental.pallas import tpu as pltpu


# ----------------------------------------------------------------------------
# Fused kernel: 3 x (DenseGCNConv + ReLU + BatchNorm1d-on-the-view)
# Activation stays as a value (vregs / compiler-managed VMEM) across layers.
# ----------------------------------------------------------------------------
def _gnn_fused_kernel(n_layers, n_nodes, batch, x_ref, adj_ref, mask_ref, *rest):
    # rest = (w0, b0, g0, beta0, ..., w_{L-1}, b_{L-1}, g_{L-1}, beta_{L-1}, out_ref)
    layer_refs = rest[: 4 * n_layers]
    out_ref = rest[4 * n_layers]

    N = n_nodes
    B = batch
    inv_cnt = 1.0 / float(B * N)                  # BN count = batch * positions

    h = x_ref[...]                                # (B*N, cin0) node-major activation
    adj = adj_ref[...]                            # (B*N, B*N) block-diag, self-loops

    for layer in range(n_layers):
        w_ref, b_ref, g_ref, be_ref = layer_refs[4 * layer: 4 * layer + 4]
        cin, cout = w_ref.shape
        k = cout // N                             # lane segments per node row

        # ---- DenseGCNConv (batch folded) + bias + mask + ReLU --------------
        h = jnp.dot(h, w_ref[...], preferred_element_type=jnp.float32)   # (B*N, cout)
        h = jnp.dot(adj, h, preferred_element_type=jnp.float32)          # (B*N, cout)
        h = (h + b_ref[...]) * mask_ref[:, 0:cout]                       # bias + mask
        h = jnp.maximum(h, 0.0)                                          # ReLU

        # ---- BatchNorm1d on the torch .view(B, cout, N) WITHOUT relayout ---
        # Channel c = n*k + s  <->  lane segment [s*N, (s+1)*N) of node row n.
        segs = []
        for s in range(k):
            seg = h[:, s * N:(s + 1) * N]                        # (B*N, N)
            rs = jnp.sum(seg, axis=1, keepdims=True)             # (B*N, 1)
            rq = jnp.sum(seg * seg, axis=1, keepdims=True)       # (B*N, 1)
            csum = rs[0:N, :]
            csq = rq[0:N, :]
            for b in range(1, B):                                # fold over batch
                csum = csum + rs[b * N:(b + 1) * N, :]
                csq = csq + rq[b * N:(b + 1) * N, :]
            mean = csum * inv_cnt                                # (N, 1) per-channel
            var = csq * inv_cnt - mean * mean                    # biased variance
            inv = lax.rsqrt(var + 1e-5)
            a_col = inv * g_ref[:, s:s + 1]                      # scale   (N, 1)
            b_col = be_ref[:, s:s + 1] - mean * a_col            # shift   (N, 1)
            a_full = jnp.concatenate([a_col] * B, axis=0)        # (B*N, 1)
            b_full = jnp.concatenate([b_col] * B, axis=0)        # (B*N, 1)
            segs.append(seg * a_full + b_full)                   # fused affine
        h = jnp.concatenate(segs, axis=1) if k > 1 else segs[0]  # (B*N, cout)

    out_ref[...] = h


# ----------------------------------------------------------------------------
# Wrapper: hoists constant prep (self-loops, block-diag, broadcasts, BN grids).
# ----------------------------------------------------------------------------
def gnn_forward(x, adj, mask, params):
    """x: (B, N, Cin); adj: (B, N, N); mask: (B, N);
    params: list of (w (Cin,Cout), b (Cout,), gamma (Cout,), beta (Cout,))."""
    B, N, cin0 = x.shape
    couts = [w.shape[1] for (w, _, _, _) in params]
    c_max = max(couts)
    for co in couts:
        # TODO(synk): general cout/N ratios need a (B, cout, N) relayout path
        # (single bulk reshape per layer); not needed for these module widths.
        assert co % N == 0, "layout-free BN path requires cout % N == 0"

    # Hoisted constants for the whole forward pass.
    eye = jnp.eye(N, dtype=jnp.float32)
    adj_sl = jnp.where(eye[None, :, :] > 0, jnp.float32(1.0),
                       adj.astype(jnp.float32))                  # self-loops
    adj_bd = jnp.zeros((B * N, B * N), jnp.float32)              # block-diagonal
    for b in range(B):
        adj_bd = adj_bd.at[b * N:(b + 1) * N, b * N:(b + 1) * N].set(adj_sl[b])

    x_flat = x.reshape(B * N, cin0).astype(jnp.float32)
    mask_b = jnp.broadcast_to(mask.reshape(B, N, 1).astype(jnp.float32),
                              (B, N, c_max)).reshape(B * N, c_max)

    inputs = [x_flat, adj_bd, mask_b]
    in_specs = [
        pl.BlockSpec((B * N, cin0), lambda i: (0, 0)),
        pl.BlockSpec((B * N, B * N), lambda i: (0, 0)),
        pl.BlockSpec((B * N, c_max), lambda i: (0, 0)),
    ]
    for (w, b, gamma, beta) in params:
        cin, cout = w.shape
        k = cout // N
        inputs += [
            w.astype(jnp.float32),
            b.reshape(1, cout).astype(jnp.float32),
            gamma.astype(jnp.float32).reshape(N, k),   # grid[n, s] = gamma[n*k + s]
            beta.astype(jnp.float32).reshape(N, k),
        ]
        in_specs += [
            pl.BlockSpec((cin, cout), lambda i: (0, 0)),
            pl.BlockSpec((1, cout), lambda i: (0, 0)),
            pl.BlockSpec((N, k), lambda i: (0, 0)),
            pl.BlockSpec((N, k), lambda i: (0, 0)),
        ]

    kernel = functools.partial(_gnn_fused_kernel, len(params), N, B)
    out = pl.pallas_call(
        kernel,
        out_shape=jax.ShapeDtypeStruct((B * N, couts[-1]), jnp.float32),
        grid=(1,),
        in_specs=in_specs,
        out_specs=pl.BlockSpec((B * N, couts[-1]), lambda i: (0, 0)),
        compiler_params=pltpu.CompilerParams(dimension_semantics=("arbitrary",)),
    )(*inputs)
    return out.reshape(B, N, couts[-1])


# ----------------------------------------------------------------------------
# Pure-JAX reference for verification.
# ----------------------------------------------------------------------------
def gnn_reference(x, adj, mask, params):
    B, N, _ = x.shape
    eye = jnp.eye(N, dtype=x.dtype)
    adj_sl = jnp.where(eye[None, :, :] > 0, 1.0, adj)
    m3 = mask.reshape(B, N, 1).astype(x.dtype)
    h = x
    for (w, b, gamma, beta) in params:
        out = jnp.einsum("bnk,kc->bnc", h, w)
        out = jnp.einsum("bnm,bmc->bnc", adj_sl, out)
        out = (out + b.reshape(1, 1, -1)) * m3
        out = jnp.maximum(out, 0.0)
        C = out.shape[-1]
        v = out.reshape(B, C, N)                      # torch .view(B, -1, N)
        mean = jnp.mean(v, axis=(0, 2), keepdims=True)
        var = jnp.mean((v - mean) ** 2, axis=(0, 2), keepdims=True)
        v = (v - mean) * lax.rsqrt(var + 1e-5)
        v = v * gamma.reshape(1, -1, 1) + beta.reshape(1, -1, 1)
        h = v.reshape(B, N, C)                        # torch .view(B, N, -1)
    return h


if __name__ == "__main__":
    B, N = 2, 16
    in_channels, hidden_channels, out_channels = 8, 32, 32

    key = jax.random.PRNGKey(0)
    keys = jax.random.split(key, 16)

    x = jax.random.normal(keys[0], (B, N, in_channels), dtype=jnp.float32)

    a = jax.random.uniform(keys[1], (B, N, N), dtype=jnp.float32)
    adj = ((a + jnp.swapaxes(a, 1, 2)) > 1.0).astype(jnp.float32)  # symmetric 0/1 adjacency

    # mask: batch 0 uses all nodes, batch 1 masks out the last 4 nodes
    node_ids = jnp.arange(N)
    mask = jnp.stack([jnp.ones((N,), jnp.float32),
                      (node_ids < 12).astype(jnp.float32)], axis=0)   # (B, N)

    # Deterministic parameters for the three GCN + BN layers.
    dims = [(in_channels, hidden_channels),
            (hidden_channels, hidden_channels),
            (hidden_channels, out_channels)]
    params = []
    k = 2
    for (ci, co) in dims:
        w = 0.2 * jax.random.normal(keys[k], (ci, co), dtype=jnp.float32)
        b = 0.1 * jax.random.normal(keys[k + 1], (co,), dtype=jnp.float32)
        gamma = 1.0 + 0.1 * jax.random.normal(keys[k + 2], (co,), dtype=jnp.float32)
        beta = 0.1 * jax.random.normal(keys[k + 3], (co,), dtype=jnp.float32)
        params.append((w, b, gamma, beta))
        k += 4

    out = gnn_forward(x, adj, mask, params)
    out = jax.block_until_ready(out)

    ref = gnn_reference(x, adj, mask, params)

    assert out.shape == (B, N, out_channels)
    if not jnp.allclose(out, ref, rtol=1e-3, atol=1e-3):
        max_err = jnp.max(jnp.abs(out - ref))
        raise AssertionError(f"mismatch vs reference, max abs err = {max_err}")

    print("KERNEL_OK")
</pallas_src>

<mosaic_0001>
module attributes {stable_mosaic.version = 11 : i64} {
  func.func @_gnn_fused_kernel(%arg0: i32, %arg1: memref<32x8xf32, #tpu.memory_space<vmem>>, %arg2: memref<32x32xf32, #tpu.memory_space<vmem>>, %arg3: memref<32x32xf32, #tpu.memory_space<vmem>>, %arg4: memref<8x32xf32, #tpu.memory_space<vmem>>, %arg5: memref<1x32xf32, #tpu.memory_space<vmem>>, %arg6: memref<16x2xf32, #tpu.memory_space<vmem>>, %arg7: memref<16x2xf32, #tpu.memory_space<vmem>>, %arg8: memref<32x32xf32, #tpu.memory_space<vmem>>, %arg9: memref<1x32xf32, #tpu.memory_space<vmem>>, %arg10: memref<16x2xf32, #tpu.memory_space<vmem>>, %arg11: memref<16x2xf32, #tpu.memory_space<vmem>>, %arg12: memref<32x32xf32, #tpu.memory_space<vmem>>, %arg13: memref<1x32xf32, #tpu.memory_space<vmem>>, %arg14: memref<16x2xf32, #tpu.memory_space<vmem>>, %arg15: memref<16x2xf32, #tpu.memory_space<vmem>>, %arg16: memref<32x32xf32, #tpu.memory_space<vmem>>) attributes {dimension_semantics = [#tpu.dimension_semantics<arbitrary>], iteration_bounds = array<i64: 1>, scalar_prefetch = 0 : i64, scratch_operands = 0 : i64, tpu.core_type = #tpu.core_type<tc>, window_params = [{pipeline_mode = #tpu.pipeline_mode<synchronous>, transform_indices = @transform_0, window_bounds = array<i64: 32, 8>}, {pipeline_mode = #tpu.pipeline_mode<synchronous>, transform_indices = @transform_1, window_bounds = array<i64: 32, 32>}, {pipeline_mode = #tpu.pipeline_mode<synchronous>, transform_indices = @transform_2, window_bounds = array<i64: 32, 32>}, {pipeline_mode = #tpu.pipeline_mode<synchronous>, transform_indices = @transform_3, window_bounds = array<i64: 8, 32>}, {pipeline_mode = #tpu.pipeline_mode<synchronous>, transform_indices = @transform_4, window_bounds = array<i64: 1, 32>}, {pipeline_mode = #tpu.pipeline_mode<synchronous>, transform_indices = @transform_5, window_bounds = array<i64: 16, 2>}, {pipeline_mode = #tpu.pipeline_mode<synchronous>, transform_indices = @transform_6, window_bounds = array<i64: 16, 2>}, {pipeline_mode = #tpu.pipeline_mode<synchronous>, transform_indices = @transform_7, window_bounds = array<i64: 32, 32>}, {pipeline_mode = #tpu.pipeline_mode<synchronous>, transform_indices = @transform_8, window_bounds = array<i64: 1, 32>}, {pipeline_mode = #tpu.pipeline_mode<synchronous>, transform_indices = @transform_9, window_bounds = array<i64: 16, 2>}, {pipeline_mode = #tpu.pipeline_mode<synchronous>, transform_indices = @transform_10, window_bounds = array<i64: 16, 2>}, {pipeline_mode = #tpu.pipeline_mode<synchronous>, transform_indices = @transform_11, window_bounds = array<i64: 32, 32>}, {pipeline_mode = #tpu.pipeline_mode<synchronous>, transform_indices = @transform_12, window_bounds = array<i64: 1, 32>}, {pipeline_mode = #tpu.pipeline_mode<synchronous>, transform_indices = @transform_13, window_bounds = array<i64: 16, 2>}, {pipeline_mode = #tpu.pipeline_mode<synchronous>, transform_indices = @transform_14, window_bounds = array<i64: 16, 2>}, {pipeline_mode = #tpu.pipeline_mode<synchronous>, transform_indices = @transform_15, window_bounds = array<i64: 32, 32>}]} {
    %c0 = arith.constant 0 : index
    %c0_0 = arith.constant 0 : index
    %0 = vector.load %arg1[%c0, %c0_0] : memref<32x8xf32, #tpu.memory_space<vmem>>, vector<32x8xf32>
    %c0_1 = arith.constant 0 : index
    %c0_2 = arith.constant 0 : index
    %1 = vector.load %arg2[%c0_1, %c0_2] : memref<32x32xf32, #tpu.memory_space<vmem>>, vector<32x32xf32>
    %c0_3 = arith.constant 0 : index
    %c0_4 = arith.constant 0 : index
    %2 = vector.load %arg4[%c0_3, %c0_4] : memref<8x32xf32, #tpu.memory_space<vmem>>, vector<8x32xf32>
    %cst = arith.constant dense<0.000000e+00> : vector<32x32xf32>
    %3 = tpu.matmul %0, %2, %cst {dimension_numbers = #tpu.dot_dimension_numbers<[1], [0], [0], [1], [0, 0, 1, 1], [], []>} : vector<32x8xf32>, vector<8x32xf32>, vector<32x32xf32> -> vector<32x32xf32>
    %cst_5 = arith.constant dense<0.000000e+00> : vector<32x32xf32>
    %4 = tpu.matmul %1, %3, %cst_5 {dimension_numbers = #tpu.dot_dimension_numbers<[1], [0], [0], [1], [0, 0, 1, 1], [], []>} : vector<32x32xf32>, vector<32x32xf32>, vector<32x32xf32> -> vector<32x32xf32>
    %c0_6 = arith.constant 0 : index
    %c0_7 = arith.constant 0 : index
    %5 = vector.load %arg5[%c0_6, %c0_7] : memref<1x32xf32, #tpu.memory_space<vmem>>, vector<1x32xf32>
    %6 = vector.broadcast %5 : vector<1x32xf32> to vector<32x32xf32>
    %7 = arith.addf %4, %6 : vector<32x32xf32>
    %c0_8 = arith.constant 0 : index
    %c0_9 = arith.constant 0 : index
    %8 = vector.load %arg3[%c0_8, %c0_9] : memref<32x32xf32, #tpu.memory_space<vmem>>, vector<32x32xf32>
    %9 = arith.mulf %7, %8 : vector<32x32xf32>
    %cst_10 = arith.constant 0.000000e+00 : f32
    %10 = vector.broadcast %cst_10 : f32 to vector<32x32xf32>
    %11 = arith.maximumf %9, %10 : vector<32x32xf32>
    %12 = vector.extract_strided_slice %11 {offsets = [0, 0], sizes = [32, 16], strides = [1, 1]} : vector<32x32xf32> to vector<32x16xf32>
    %cst_11 = arith.constant dense<0.000000e+00> : vector<32xf32>
    %13 = vector.multi_reduction <add>, %12, %cst_11 [1] : vector<32x16xf32> to vector<32xf32>
    %14 = vector.shape_cast %13 : vector<32xf32> to vector<32x1xf32>
    %15 = arith.mulf %12, %12 : vector<32x16xf32>
    %cst_12 = arith.constant dense<0.000000e+00> : vector<32xf32>
    %16 = vector.multi_reduction <add>, %15, %cst_12 [1] : vector<32x16xf32> to vector<32xf32>
    %17 = vector.shape_cast %16 : vector<32xf32> to vector<32x1xf32>
    %18 = vector.extract_strided_slice %14 {offsets = [0, 0], sizes = [16, 1], strides = [1, 1]} : vector<32x1xf32> to vector<16x1xf32>
    %19 = vector.extract_strided_slice %17 {offsets = [0, 0], sizes = [16, 1], strides = [1, 1]} : vector<32x1xf32> to vector<16x1xf32>
    %20 = vector.extract_strided_slice %14 {offsets = [16, 0], sizes = [16, 1], strides = [1, 1]} : vector<32x1xf32> to vector<16x1xf32>
    %21 = arith.addf %18, %20 : vector<16x1xf32>
    %22 = vector.extract_strided_slice %17 {offsets = [16, 0], sizes = [16, 1], strides = [1, 1]} : vector<32x1xf32> to vector<16x1xf32>
    %23 = arith.addf %19, %22 : vector<16x1xf32>
    %cst_13 = arith.constant 3.125000e-02 : f32
    %24 = vector.broadcast %cst_13 : f32 to vector<16x1xf32>
    %25 = arith.mulf %21, %24 : vector<16x1xf32>
    %cst_14 = arith.constant 3.125000e-02 : f32
    %26 = vector.broadcast %cst_14 : f32 to vector<16x1xf32>
    %27 = arith.mulf %23, %26 : vector<16x1xf32>
    %28 = arith.mulf %25, %25 : vector<16x1xf32>
    %29 = arith.subf %27, %28 : vector<16x1xf32>
    %cst_15 = arith.constant 9.99999974E-6 : f32
    %30 = vector.broadcast %cst_15 : f32 to vector<16x1xf32>
    %31 = arith.addf %29, %30 : vector<16x1xf32>
    %32 = math.rsqrt %31 : vector<16x1xf32>
    %c0_16 = arith.constant 0 : index
    %c0_17 = arith.constant 0 : index
    %33 = vector.load %arg6[%c0_16, %c0_17] : memref<16x2xf32, #tpu.memory_space<vmem>>, vector<16x1xf32>
    %34 = arith.mulf %32, %33 : vector<16x1xf32>
    %c0_18 = arith.constant 0 : index
    %c0_19 = arith.constant 0 : index
    %35 = vector.load %arg7[%c0_18, %c0_19] : memref<16x2xf32, #tpu.memory_space<vmem>>, vector<16x1xf32>
    %36 = arith.mulf %25, %34 : vector<16x1xf32>
    %37 = arith.subf %35, %36 : vector<16x1xf32>
    %38 = tpu.concatenate %34, %34 in 0 : vector<16x1xf32>, vector<16x1xf32> -> vector<32x1xf32>
    %39 = tpu.concatenate %37, %37 in 0 : vector<16x1xf32>, vector<16x1xf32> -> vector<32x1xf32>
    %40 = vector.broadcast %38 : vector<32x1xf32> to vector<32x16xf32>
    %41 = arith.mulf %12, %40 : vector<32x16xf32>
    %42 = vector.broadcast %39 : vector<32x1xf32> to vector<32x16xf32>
    %43 = arith.addf %41, %42 : vector<32x16xf32>
    %44 = vector.extract_strided_slice %11 {offsets = [0, 16], sizes = [32, 16], strides = [1, 1]} : vector<32x32xf32> to vector<32x16xf32>
    %cst_20 = arith.constant dense<0.000000e+00> : vector<32xf32>
    %45 = vector.multi_reduction <add>, %44, %cst_20 [1] : vector<32x16xf32> to vector<32xf32>
    %46 = vector.shape_cast %45 : vector<32xf32> to vector<32x1xf32>
    %47 = arith.mulf %44, %44 : vector<32x16xf32>
    %cst_21 = arith.constant dense<0.000000e+00> : vector<32xf32>
    %48 = vector.multi_reduction <add>, %47, %cst_21 [1] : vector<32x16xf32> to vector<32xf32>
    %49 = vector.shape_cast %48 : vector<32xf32> to vector<32x1xf32>
    %50 = vector.extract_strided_slice %46 {offsets = [0, 0], sizes = [16, 1], strides = [1, 1]} : vector<32x1xf32> to vector<16x1xf32>
    %51 = vector.extract_strided_slice %49 {offsets = [0, 0], sizes = [16, 1], strides = [1, 1]} : vector<32x1xf32> to vector<16x1xf32>
    %52 = vector.extract_strided_slice %46 {offsets = [16, 0], sizes = [16, 1], strides = [1, 1]} : vector<32x1xf32> to vector<16x1xf32>
    %53 = arith.addf %50, %52 : vector<16x1xf32>
    %54 = vector.extract_strided_slice %49 {offsets = [16, 0], sizes = [16, 1], strides = [1, 1]} : vector<32x1xf32> to vector<16x1xf32>
    %55 = arith.addf %51, %54 : vector<16x1xf32>
    %cst_22 = arith.constant 3.125000e-02 : f32
    %56 = vector.broadcast %cst_22 : f32 to vector<16x1xf32>
    %57 = arith.mulf %53, %56 : vector<16x1xf32>
    %cst_23 = arith.constant 3.125000e-02 : f32
    %58 = vector.broadcast %cst_23 : f32 to vector<16x1xf32>
    %59 = arith.mulf %55, %58 : vector<16x1xf32>
    %60 = arith.mulf %57, %57 : vector<16x1xf32>
    %61 = arith.subf %59, %60 : vector<16x1xf32>
    %cst_24 = arith.constant 9.99999974E-6 : f32
    %62 = vector.broadcast %cst_24 : f32 to vector<16x1xf32>
    %63 = arith.addf %61, %62 : vector<16x1xf32>
    %64 = math.rsqrt %63 : vector<16x1xf32>
    %c0_25 = arith.constant 0 : index
    %c1 = arith.constant 1 : index
    %65 = vector.load %arg6[%c0_25, %c1] : memref<16x2xf32, #tpu.memory_space<vmem>>, vector<16x1xf32>
    %66 = arith.mulf %64, %65 : vector<16x1xf32>
    %c0_26 = arith.constant 0 : index
    %c1_27 = arith.constant 1 : index
    %67 = vector.load %arg7[%c0_26, %c1_27] : memref<16x2xf32, #tpu.memory_space<vmem>>, vector<16x1xf32>
    %68 = arith.mulf %57, %66 : vector<16x1xf32>
    %69 = arith.subf %67, %68 : vector<16x1xf32>
    %70 = tpu.concatenate %66, %66 in 0 : vector<16x1xf32>, vector<16x1xf32> -> vector<32x1xf32>
    %71 = tpu.concatenate %69, %69 in 0 : vector<16x1xf32>, vector<16x1xf32> -> vector<32x1xf32>
    %72 = vector.broadcast %70 : vector<32x1xf32> to vector<32x16xf32>
    %73 = arith.mulf %44, %72 : vector<32x16xf32>
    %74 = vector.broadcast %71 : vector<32x1xf32> to vector<32x16xf32>
    %75 = arith.addf %73, %74 : vector<32x16xf32>
    %76 = tpu.concatenate %43, %75 in 1 : vector<32x16xf32>, vector<32x16xf32> -> vector<32x32xf32>
    %c0_28 = arith.constant 0 : index
    %c0_29 = arith.constant 0 : index
    %77 = vector.load %arg8[%c0_28, %c0_29] : memref<32x32xf32, #tpu.memory_space<vmem>>, vector<32x32xf32>
    %cst_30 = arith.constant dense<0.000000e+00> : vector<32x32xf32>
    %78 = tpu.matmul %76, %77, %cst_30 {dimension_numbers = #tpu.dot_dimension_numbers<[1], [0], [0], [1], [0, 0, 1, 1], [], []>} : vector<32x32xf32>, vector<32x32xf32>, vector<32x32xf32> -> vector<32x32xf32>
    %cst_31 = arith.constant dense<0.000000e+00> : vector<32x32xf32>
    %79 = tpu.matmul %1, %78, %cst_31 {dimension_numbers = #tpu.dot_dimension_numbers<[1], [0], [0], [1], [0, 0, 1, 1], [], []>} : vector<32x32xf32>, vector<32x32xf32>, vector<32x32xf32> -> vector<32x32xf32>
    %c0_32 = arith.constant 0 : index
    %c0_33 = arith.constant 0 : index
    %80 = vector.load %arg9[%c0_32, %c0_33] : memref<1x32xf32, #tpu.memory_space<vmem>>, vector<1x32xf32>
    %81 = vector.broadcast %80 : vector<1x32xf32> to vector<32x32xf32>
    %82 = arith.addf %79, %81 : vector<32x32xf32>
    %c0_34 = arith.constant 0 : index
    %c0_35 = arith.constant 0 : index
    %83 = vector.load %arg3[%c0_34, %c0_35] : memref<32x32xf32, #tpu.memory_space<vmem>>, vector<32x32xf32>
    %84 = arith.mulf %82, %83 : vector<32x32xf32>
    %cst_36 = arith.constant 0.000000e+00 : f32
    %85 = vector.broadcast %cst_36 : f32 to vector<32x32xf32>
    %86 = arith.maximumf %84, %85 : vector<32x32xf32>
    %87 = vector.extract_strided_slice %86 {offsets = [0, 0], sizes = [32, 16], strides = [1, 1]} : vector<32x32xf32> to vector<32x16xf32>
    %cst_37 = arith.constant dense<0.000000e+00> : vector<32xf32>
    %88 = vector.multi_reduction <add>, %87, %cst_37 [1] : vector<32x16xf32> to vector<32xf32>
    %89 = vector.shape_cast %88 : vector<32xf32> to vector<32x1xf32>
    %90 = arith.mulf %87, %87 : vector<32x16xf32>
    %cst_38 = arith.constant dense<0.000000e+00> : vector<32xf32>
    %91 = vector.multi_reduction <add>, %90, %cst_38 [1] : vector<32x16xf32> to vector<32xf32>
    %92 = vector.shape_cast %91 : vector<32xf32> to vector<32x1xf32>
    %93 = vector.extract_strided_slice %89 {offsets = [0, 0], sizes = [16, 1], strides = [1, 1]} : vector<32x1xf32> to vector<16x1xf32>
    %94 = vector.extract_strided_slice %92 {offsets = [0, 0], sizes = [16, 1], strides = [1, 1]} : vector<32x1xf32> to vector<16x1xf32>
    %95 = vector.extract_strided_slice %89 {offsets = [16, 0], sizes = [16, 1], strides = [1, 1]} : vector<32x1xf32> to vector<16x1xf32>
    %96 = arith.addf %93, %95 : vector<16x1xf32>
    %97 = vector.extract_strided_slice %92 {offsets = [16, 0], sizes = [16, 1], strides = [1, 1]} : vector<32x1xf32> to vector<16x1xf32>
    %98 = arith.addf %94, %97 : vector<16x1xf32>
    %cst_39 = arith.constant 3.125000e-02 : f32
    %99 = vector.broadcast %cst_39 : f32 to vector<16x1xf32>
    %100 = arith.mulf %96, %99 : vector<16x1xf32>
    %cst_40 = arith.constant 3.125000e-02 : f32
    %101 = vector.broadcast %cst_40 : f32 to vector<16x1xf32>
    %102 = arith.mulf %98, %101 : vector<16x1xf32>
    %103 = arith.mulf %100, %100 : vector<16x1xf32>
    %104 = arith.subf %102, %103 : vector<16x1xf32>
    %cst_41 = arith.constant 9.99999974E-6 : f32
    %105 = vector.broadcast %cst_41 : f32 to vector<16x1xf32>
    %106 = arith.addf %104, %105 : vector<16x1xf32>
    %107 = math.rsqrt %106 : vector<16x1xf32>
    %c0_42 = arith.constant 0 : index
    %c0_43 = arith.constant 0 : index
    %108 = vector.load %arg10[%c0_42, %c0_43] : memref<16x2xf32, #tpu.memory_space<vmem>>, vector<16x1xf32>
    %109 = arith.mulf %107, %108 : vector<16x1xf32>
    %c0_44 = arith.constant 0 : index
    %c0_45 = arith.constant 0 : index
    %110 = vector.load %arg11[%c0_44, %c0_45] : memref<16x2xf32, #tpu.memory_space<vmem>>, vector<16x1xf32>
    %111 = arith.mulf %100, %109 : vector<16x1xf32>
    %112 = arith.subf %110, %111 : vector<16x1xf32>
    %113 = tpu.concatenate %109, %109 in 0 : vector<16x1xf32>, vector<16x1xf32> -> vector<32x1xf32>
    %114 = tpu.concatenate %112, %112 in 0 : vector<16x1xf32>, vector<16x1xf32> -> vector<32x1xf32>
    %115 = vector.broadcast %113 : vector<32x1xf32> to vector<32x16xf32>
    %116 = arith.mulf %87, %115 : vector<32x16xf32>
    %117 = vector.broadcast %114 : vector<32x1xf32> to vector<32x16xf32>
    %118 = arith.addf %116, %117 : vector<32x16xf32>
    %119 = vector.extract_strided_slice %86 {offsets = [0, 16], sizes = [32, 16], strides = [1, 1]} : vector<32x32xf32> to vector<32x16xf32>
    %cst_46 = arith.constant dense<0.000000e+00> : vector<32xf32>
    %120 = vector.multi_reduction <add>, %119, %cst_46 [1] : vector<32x16xf32> to vector<32xf32>
    %121 = vector.shape_cast %120 : vector<32xf32> to vector<32x1xf32>
    %122 = arith.mulf %119, %119 : vector<32x16xf32>
    %cst_47 = arith.constant dense<0.000000e+00> : vector<32xf32>
    %123 = vector.multi_reduction <add>, %122, %cst_47 [1] : vector<32x16xf32> to vector<32xf32>
    %124 = vector.shape_cast %123 : vector<32xf32> to vector<32x1xf32>
    %125 = vector.extract_strided_slice %121 {offsets = [0, 0], sizes = [16, 1], strides = [1, 1]} : vector<32x1xf32> to vector<16x1xf32>
    %126 = vector.extract_strided_slice %124 {offsets = [0, 0], sizes = [16, 1], strides = [1, 1]} : vector<32x1xf32> to vector<16x1xf32>
    %127 = vector.extract_strided_slice %121 {offsets = [16, 0], sizes = [16, 1], strides = [1, 1]} : vector<32x1xf32> to vector<16x1xf32>
    %128 = arith.addf %125, %127 : vector<16x1xf32>
    %129 = vector.extract_strided_slice %124 {offsets = [16, 0], sizes = [16, 1], strides = [1, 1]} : vector<32x1xf32> to vector<16x1xf32>
    %130 = arith.addf %126, %129 : vector<16x1xf32>
    %cst_48 = arith.constant 3.125000e-02 : f32
    %131 = vector.broadcast %cst_48 : f32 to vector<16x1xf32>
    %132 = arith.mulf %128, %131 : vector<16x1xf32>
    %cst_49 = arith.constant 3.125000e-02 : f32
    %133 = vector.broadcast %cst_49 : f32 to vector<16x1xf32>
    %134 = arith.mulf %130, %133 : vector<16x1xf32>
    %135 = arith.mulf %132, %132 : vector<16x1xf32>
    %136 = arith.subf %134, %135 : vector<16x1xf32>
    %cst_50 = arith.constant 9.99999974E-6 : f32
    %137 = vector.broadcast %cst_50 : f32 to vector<16x1xf32>
    %138 = arith.addf %136, %137 : vector<16x1xf32>
    %139 = math.rsqrt %138 : vector<16x1xf32>
    %c0_51 = arith.constant 0 : index
    %c1_52 = arith.constant 1 : index
    %140 = vector.load %arg10[%c0_51, %c1_52] : memref<16x2xf32, #tpu.memory_space<vmem>>, vector<16x1xf32>
    %141 = arith.mulf %139, %140 : vector<16x1xf32>
    %c0_53 = arith.constant 0 : index
    %c1_54 = arith.constant 1 : index
    %142 = vector.load %arg11[%c0_53, %c1_54] : memref<16x2xf32, #tpu.memory_space<vmem>>, vector<16x1xf32>
    %143 = arith.mulf %132, %141 : vector<16x1xf32>
    %144 = arith.subf %142, %143 : vector<16x1xf32>
    %145 = tpu.concatenate %141, %141 in 0 : vector<16x1xf32>, vector<16x1xf32> -> vector<32x1xf32>
    %146 = tpu.concatenate %144, %144 in 0 : vector<16x1xf32>, vector<16x1xf32> -> vector<32x1xf32>
    %147 = vector.broadcast %145 : vector<32x1xf32> to vector<32x16xf32>
    %148 = arith.mulf %119, %147 : vector<32x16xf32>
    %149 = vector.broadcast %146 : vector<32x1xf32> to vector<32x16xf32>
    %150 = arith.addf %148, %149 : vector<32x16xf32>
    %151 = tpu.concatenate %118, %150 in 1 : vector<32x16xf32>, vector<32x16xf32> -> vector<32x32xf32>
    %c0_55 = arith.constant 0 : index
    %c0_56 = arith.constant 0 : index
    %152 = vector.load %arg12[%c0_55, %c0_56] : memref<32x32xf32, #tpu.memory_space<vmem>>, vector<32x32xf32>
    %cst_57 = arith.constant dense<0.000000e+00> : vector<32x32xf32>
    %153 = tpu.matmul %151, %152, %cst_57 {dimension_numbers = #tpu.dot_dimension_numbers<[1], [0], [0], [1], [0, 0, 1, 1], [], []>} : vector<32x32xf32>, vector<32x32xf32>, vector<32x32xf32> -> vector<32x32xf32>
    %cst_58 = arith.constant dense<0.000000e+00> : vector<32x32xf32>
    %154 = tpu.matmul %1, %153, %cst_58 {dimension_numbers = #tpu.dot_dimension_numbers<[1], [0], [0], [1], [0, 0, 1, 1], [], []>} : vector<32x32xf32>, vector<32x32xf32>, vector<32x32xf32> -> vector<32x32xf32>
    %c0_59 = arith.constant 0 : index
    %c0_60 = arith.constant 0 : index
    %155 = vector.load %arg13[%c0_59, %c0_60] : memref<1x32xf32, #tpu.memory_space<vmem>>, vector<1x32xf32>
    %156 = vector.broadcast %155 : vector<1x32xf32> to vector<32x32xf32>
    %157 = arith.addf %154, %156 : vector<32x32xf32>
    %c0_61 = arith.constant 0 : index
    %c0_62 = arith.constant 0 : index
    %158 = vector.load %arg3[%c0_61, %c0_62] : memref<32x32xf32, #tpu.memory_space<vmem>>, vector<32x32xf32>
    %159 = arith.mulf %157, %158 : vector<32x32xf32>
    %cst_63 = arith.constant 0.000000e+00 : f32
    %160 = vector.broadcast %cst_63 : f32 to vector<32x32xf32>
    %161 = arith.maximumf %159, %160 : vector<32x32xf32>
    %162 = vector.extract_strided_slice %161 {offsets = [0, 0], sizes = [32, 16], strides = [1, 1]} : vector<32x32xf32> to vector<32x16xf32>
    %cst_64 = arith.constant dense<0.000000e+00> : vector<32xf32>
    %163 = vector.multi_reduction <add>, %162, %cst_64 [1] : vector<32x16xf32> to vector<32xf32>
    %164 = vector.shape_cast %163 : vector<32xf32> to vector<32x1xf32>
    %165 = arith.mulf %162, %162 : vector<32x16xf32>
    %cst_65 = arith.constant dense<0.000000e+00> : vector<32xf32>
    %166 = vector.multi_reduction <add>, %165, %cst_65 [1] : vector<32x16xf32> to vector<32xf32>
    %167 = vector.shape_cast %166 : vector<32xf32> to vector<32x1xf32>
    %168 = vector.extract_strided_slice %164 {offsets = [0, 0], sizes = [16, 1], strides = [1, 1]} : vector<32x1xf32> to vector<16x1xf32>
    %169 = vector.extract_strided_slice %167 {offsets = [0, 0], sizes = [16, 1], strides = [1, 1]} : vector<32x1xf32> to vector<16x1xf32>
    %170 = vector.extract_strided_slice %164 {offsets = [16, 0], sizes = [16, 1], strides = [1, 1]} : vector<32x1xf32> to vector<16x1xf32>
    %171 = arith.addf %168, %170 : vector<16x1xf32>
    %172 = vector.extract_strided_slice %167 {offsets = [16, 0], sizes = [16, 1], strides = [1, 1]} : vector<32x1xf32> to vector<16x1xf32>
    %173 = arith.addf %169, %172 : vector<16x1xf32>
    %cst_66 = arith.constant 3.125000e-02 : f32
    %174 = vector.broadcast %cst_66 : f32 to vector<16x1xf32>
    %175 = arith.mulf %171, %174 : vector<16x1xf32>
    %cst_67 = arith.constant 3.125000e-02 : f32
    %176 = vector.broadcast %cst_67 : f32 to vector<16x1xf32>
    %177 = arith.mulf %173, %176 : vector<16x1xf32>
    %178 = arith.mulf %175, %175 : vector<16x1xf32>
    %179 = arith.subf %177, %178 : vector<16x1xf32>
    %cst_68 = arith.constant 9.99999974E-6 : f32
    %180 = vector.broadcast %cst_68 : f32 to vector<16x1xf32>
    %181 = arith.addf %179, %180 : vector<16x1xf32>
    %182 = math.rsqrt %181 : vector<16x1xf32>
    %c0_69 = arith.constant 0 : index
    %c0_70 = arith.constant 0 : index
    %183 = vector.load %arg14[%c0_69, %c0_70] : memref<16x2xf32, #tpu.memory_space<vmem>>, vector<16x1xf32>
    %184 = arith.mulf %182, %183 : vector<16x1xf32>
    %c0_71 = arith.constant 0 : index
    %c0_72 = arith.constant 0 : index
    %185 = vector.load %arg15[%c0_71, %c0_72] : memref<16x2xf32, #tpu.memory_space<vmem>>, vector<16x1xf32>
    %186 = arith.mulf %175, %184 : vector<16x1xf32>
    %187 = arith.subf %185, %186 : vector<16x1xf32>
    %188 = tpu.concatenate %184, %184 in 0 : vector<16x1xf32>, vector<16x1xf32> -> vector<32x1xf32>
    %189 = tpu.concatenate %187, %187 in 0 : vector<16x1xf32>, vector<16x1xf32> -> vector<32x1xf32>
    %190 = vector.broadcast %188 : vector<32x1xf32> to vector<32x16xf32>
    %191 = arith.mulf %162, %190 : vector<32x16xf32>
    %192 = vector.broadcast %189 : vector<32x1xf32> to vector<32x16xf32>
    %193 = arith.addf %191, %192 : vector<32x16xf32>
    %194 = vector.extract_strided_slice %161 {offsets = [0, 16], sizes = [32, 16], strides = [1, 1]} : vector<32x32xf32> to vector<32x16xf32>
    %cst_73 = arith.constant dense<0.000000e+00> : vector<32xf32>
    %195 = vector.multi_reduction <add>, %194, %cst_73 [1] : vector<32x16xf32> to vector<32xf32>
    %196 = vector.shape_cast %195 : vector<32xf32> to vector<32x1xf32>
    %197 = arith.mulf %194, %194 : vector<32x16xf32>
    %cst_74 = arith.constant dense<0.000000e+00> : vector<32xf32>
    %198 = vector.multi_reduction <add>, %197, %cst_74 [1] : vector<32x16xf32> to vector<32xf32>
    %199 = vector.shape_cast %198 : vector<32xf32> to vector<32x1xf32>
    %200 = vector.extract_strided_slice %196 {offsets = [0, 0], sizes = [16, 1], strides = [1, 1]} : vector<32x1xf32> to vector<16x1xf32>
    %201 = vector.extract_strided_slice %199 {offsets = [0, 0], sizes = [16, 1], strides = [1, 1]} : vector<32x1xf32> to vector<16x1xf32>
    %202 = vector.extract_strided_slice %196 {offsets = [16, 0], sizes = [16, 1], strides = [1, 1]} : vector<32x1xf32> to vector<16x1xf32>
    %203 = arith.addf %200, %202 : vector<16x1xf32>
    %204 = vector.extract_strided_slice %199 {offsets = [16, 0], sizes = [16, 1], strides = [1, 1]} : vector<32x1xf32> to vector<16x1xf32>
    %205 = arith.addf %201, %204 : vector<16x1xf32>
    %cst_75 = arith.constant 3.125000e-02 : f32
    %206 = vector.broadcast %cst_75 : f32 to vector<16x1xf32>
    %207 = arith.mulf %203, %206 : vector<16x1xf32>
    %cst_76 = arith.constant 3.125000e-02 : f32
    %208 = vector.broadcast %cst_76 : f32 to vector<16x1xf32>
    %209 = arith.mulf %205, %208 : vector<16x1xf32>
    %210 = arith.mulf %207, %207 : vector<16x1xf32>
    %211 = arith.subf %209, %210 : vector<16x1xf32>
    %cst_77 = arith.constant 9.99999974E-6 : f32
    %212 = vector.broadcast %cst_77 : f32 to vector<16x1xf32>
    %213 = arith.addf %211, %212 : vector<16x1xf32>
    %214 = math.rsqrt %213 : vector<16x1xf32>
    %c0_78 = arith.constant 0 : index
    %c1_79 = arith.constant 1 : index
    %215 = vector.load %arg14[%c0_78, %c1_79] : memref<16x2xf32, #tpu.memory_space<vmem>>, vector<16x1xf32>
    %216 = arith.mulf %214, %215 : vector<16x1xf32>
    %c0_80 = arith.constant 0 : index
    %c1_81 = arith.constant 1 : index
    %217 = vector.load %arg15[%c0_80, %c1_81] : memref<16x2xf32, #tpu.memory_space<vmem>>, vector<16x1xf32>
    %218 = arith.mulf %207, %216 : vector<16x1xf32>
    %219 = arith.subf %217, %218 : vector<16x1xf32>
    %220 = tpu.concatenate %216, %216 in 0 : vector<16x1xf32>, vector<16x1xf32> -> vector<32x1xf32>
    %221 = tpu.concatenate %219, %219 in 0 : vector<16x1xf32>, vector<16x1xf32> -> vector<32x1xf32>
    %222 = vector.broadcast %220 : vector<32x1xf32> to vector<32x16xf32>
    %223 = arith.mulf %194, %222 : vector<32x16xf32>
    %224 = vector.broadcast %221 : vector<32x1xf32> to vector<32x16xf32>
    %225 = arith.addf %223, %224 : vector<32x16xf32>
    %226 = tpu.concatenate %193, %225 in 1 : vector<32x16xf32>, vector<32x16xf32> -> vector<32x32xf32>
    %c0_82 = arith.constant 0 : index
    %c0_83 = arith.constant 0 : index
    %227 = vector.load %arg16[%c0_82, %c0_83] : memref<32x32xf32, #tpu.memory_space<vmem>>, vector<32x32xf32>
    tpu.vector_store %arg16[%c0_82, %c0_83], %226 {strides = array<i32>} : memref<32x32xf32, #tpu.memory_space<vmem>>, vector<32x32xf32>,
    return
  }
  func.func @transform_0(%arg0: i32) -> (i32, i32) {
    %c0_i32 = arith.constant 0 : i32
    %c0_i32_0 = arith.constant 0 : i32
    %c0_i32_1 = arith.constant 0 : i32
    return %c0_i32, %c0_i32_0 : i32, i32
  }
  func.func @transform_1(%arg0: i32) -> (i32, i32) {
    %c0_i32 = arith.constant 0 : i32
    %c0_i32_0 = arith.constant 0 : i32
    %c0_i32_1 = arith.constant 0 : i32
    return %c0_i32, %c0_i32_0 : i32, i32
  }
  func.func @transform_2(%arg0: i32) -> (i32, i32) {
    %c0_i32 = arith.constant 0 : i32
    %c0_i32_0 = arith.constant 0 : i32
    %c0_i32_1 = arith.constant 0 : i32
    return %c0_i32, %c0_i32_0 : i32, i32
  }
  func.func @transform_3(%arg0: i32) -> (i32, i32) {
    %c0_i32 = arith.constant 0 : i32
    %c0_i32_0 = arith.constant 0 : i32
    %c0_i32_1 = arith.constant 0 : i32
    return %c0_i32, %c0_i32_0 : i32, i32
  }
  func.func @transform_4(%arg0: i32) -> (i32, i32) {
    %c0_i32 = arith.constant 0 : i32
    %c0_i32_0 = arith.constant 0 : i32
    %c0_i32_1 = arith.constant 0 : i32
    return %c0_i32, %c0_i32_0 : i32, i32
  }
  func.func @transform_5(%arg0: i32) -> (i32, i32) {
    %c0_i32 = arith.constant 0 : i32
    %c0_i32_0 = arith.constant 0 : i32
    %c0_i32_1 = arith.constant 0 : i32
    return %c0_i32, %c0_i32_0 : i32, i32
  }
  func.func @transform_6(%arg0: i32) -> (i32, i32) {
    %c0_i32 = arith.constant 0 : i32
    %c0_i32_0 = arith.constant 0 : i32
    %c0_i32_1 = arith.constant 0 : i32
    return %c0_i32, %c0_i32_0 : i32, i32
  }
  func.func @transform_7(%arg0: i32) -> (i32, i32) {
    %c0_i32 = arith.constant 0 : i32
    %c0_i32_0 = arith.constant 0 : i32
    %c0_i32_1 = arith.constant 0 : i32
    return %c0_i32, %c0_i32_0 : i32, i32
  }
  func.func @transform_8(%arg0: i32) -> (i32, i32) {
    %c0_i32 = arith.constant 0 : i32
    %c0_i32_0 = arith.constant 0 : i32
    %c0_i32_1 = arith.constant 0 : i32
    return %c0_i32, %c0_i32_0 : i32, i32
  }
  func.func @transform_9(%arg0: i32) -> (i32, i32) {
    %c0_i32 = arith.constant 0 : i32
    %c0_i32_0 = arith.constant 0 : i32
    %c0_i32_1 = arith.constant 0 : i32
    return %c0_i32, %c0_i32_0 : i32, i32
  }
  func.func @transform_10(%arg0: i32) -> (i32, i32) {
    %c0_i32 = arith.constant 0 : i32
    %c0_i32_0 = arith.constant 0 : i32
    %c0_i32_1 = arith.constant 0 : i32
    return %c0_i32, %c0_i32_0 : i32, i32
  }
  func.func @transform_11(%arg0: i32) -> (i32, i32) {
    %c0_i32 = arith.constant 0 : i32
    %c0_i32_0 = arith.constant 0 : i32
    %c0_i32_1 = arith.constant 0 : i32
    return %c0_i32, %c0_i32_0 : i32, i32
  }
  func.func @transform_12(%arg0: i32) -> (i32, i32) {
    %c0_i32 = arith.constant 0 : i32
    %c0_i32_0 = arith.constant 0 : i32
    %c0_i32_1 = arith.constant 0 : i32
    return %c0_i32, %c0_i32_0 : i32, i32
  }
  func.func @transform_13(%arg0: i32) -> (i32, i32) {
    %c0_i32 = arith.constant 0 : i32
    %c0_i32_0 = arith.constant 0 : i32
    %c0_i32_1 = arith.constant 0 : i32
    return %c0_i32, %c0_i32_0 : i32, i32
  }
  func.func @transform_14(%arg0: i32) -> (i32, i32) {
    %c0_i32 = arith.constant 0 : i32
    %c0_i32_0 = arith.constant 0 : i32
    %c0_i32_1 = arith.constant 0 : i32
    return %c0_i32, %c0_i32_0 : i32, i32
  }
  func.func @transform_15(%arg0: i32) -> (i32, i32) {
    %c0_i32 = arith.constant 0 : i32
    %c0_i32_0 = arith.constant 0 : i32
    %c0_i32_1 = arith.constant 0 : i32
    return %c0_i32, %c0_i32_0 : i32, i32
  }
}

</mosaic_0001>

<bundles_post_ra>
// kernel: tpu_custom_call.1
= control target key start
LH: loop header
LB: loop body
LE: loop exit
PB: predicated region body
PF: predicated region fallthrough
CT: control target
= control target key end

     0   :  { %vm60_vm0 = vcmask 64512   ;;  %s1998_s0 = inlined_call_operand.vmem [shape: f32[32,8], index: 0, kind: input, shape index: {}]   ;;  %s1999_s1 = inlined_call_operand.vmem [shape: f32[32,32], index: 1, kind: input, shape index: {}]   ;;  %s2000_s2 = inlined_call_operand.vmem [shape: f32[32,32], index: 2, kind: input, shape index: {}]   ;;  %s2001_s3 = inlined_call_operand.vmem [shape: f32[8,32], index: 3, kind: input, shape index: {}]   ;;  %s2002_s4 = inlined_call_operand.vmem [shape: f32[1,32], index: 4, kind: input, shape index: {}]   ;;  %s2003_s5 = inlined_call_operand.vmem [shape: f32[16,2], index: 5, kind: input, shape index: {}]   ;;  %s2004_s6 = inlined_call_operand.vmem [shape: f32[16,2], index: 6, kind: input, shape index: {}]   ;;  %s2005_s7 = inlined_call_operand.vmem [shape: f32[32,32], index: 7, kind: input, shape index: {}]   ;;  %s2006_s8 = inlined_call_operand.vmem [shape: f32[1,32], index: 8, kind: input, shape index: {}]   ;;  %s2007_s9 = inlined_call_operand.vmem [shape: f32[16,2], index: 9, kind: input, shape index: {}]   ;;  %s2008_s10 = inlined_call_operand.vmem [shape: f32[16,2], index: 10, kind: input, shape index: {}]   ;;  %s2009_s11 = inlined_call_operand.vmem [shape: f32[32,32], index: 11, kind: input, shape index: {}]   ;;  %s2010_s12 = inlined_call_operand.vmem [shape: f32[1,32], index: 12, kind: input, shape index: {}]   ;;  %s2011_s13 = inlined_call_operand.vmem [shape: f32[16,2], index: 13, kind: input, shape index: {}]   ;;  %s2012_s14 = inlined_call_operand.vmem [shape: f32[16,2], index: 14, kind: input, shape index: {}]   ;;  %s2013_s15 = inlined_call_operand.hbm [shape: f32[32,32], index: 15, kind: output, shape index: {}]  }
   0x1   :  { %v59_v0 = vld [vmem:[%s2001_s3] sm:$0xff]  ;;  %v52_v2 = vld [vmem:[%s1998_s0 + $0x8] sm:$0xff]  ;;  %v53_v3 = vld [vmem:[%s1998_s0 + $0x10] sm:$0xff] }
   0x2   :  { %v51_v1 = vld [vmem:[%s1998_s0] sm:$0xff]  ;;  %1346 = vmatprep.subr.mxu0 %v59_v0 }
   0x3   :  { %1348 = vmatprep.mubr.msk.f32.mxu0 %vm60_vm0, %v51_v1 }
   0x4   :  { %20 = vsyncpa [#allocation3], 0  ;;  %1347 = vmatpush3.msra.mxu0 %v59_v0  ;;  %v54_v4 = vld [vmem:[%s1998_s0 + $0x18] sm:$0xff]  ;;  %v1639_v5 = vld [vmem:[%s1999_s1] sm:$0xff]  ;;  %vm165_vm1 = vcmask 261120   ;;  %s1535_s26 = smov 112  }
   0x5   :  { %1349 = vmatmul.mubr.msk.f32.vlgmr.msra.gmra.mrb[0].mxu0 %vm60_vm0, %v52_v2  ;;  %1362 = vmatprep.mubr.msk.f32.mxu1 %vm165_vm1, %v1639_v5  ;;  %v1646_v12 = vld [vmem:[%s1999_s1 + $0x8] sm:$0xff]  ;;  %v1651_v13 = vld [vmem:[%s1999_s1 + $0x10] sm:$0xff]  ;;  %v1660_v14 = vld [vmem:[%s1999_s1 + $0x18] sm:$0xff]  ;;  %vm275_vm2 = vcmask 130048   ;;  %v1536_v48 = vmov 0   ;;  %v1537_v1 = vmov 1  }
   0x6   :  { %1351 = vmatprep.mubr.msk.f32.mxu0 %vm60_vm0, %v53_v3  ;;  %v1278_v15 = vld [vmem:[%s2002_s4] ss:$0 sm:$0xff]  ;;  %v1672_v17 = vld [vmem:[%s2000_s2 + $0x8] sm:$0xff]  ;;  %v1684_v25 = vld [vmem:[%s2000_s2 + $0x18] sm:$0xff]  ;;  %1474 = vset.pattern.permute.xlu1 %v1536_v48 }
   0x7   :  { %v1677_v20 = vld [vmem:[%s2000_s2] sm:$0xff]  ;;  %v1691_v29 = vld [vmem:[%s2000_s2 + $0x10] sm:$0xff]  ;;  %1475 = vset.pattern.permute.xlu0 %v1537_v1 }
   0x9   :  { %1352 = vmatmul.mubr.msk.f32.gmra.mrb[2].mxu0 %vm60_vm0, %v54_v4 }
  0xd8   :  { %v1350_v6 = vpop.f32.mrb[0].mxu0 }
  0xd9   :  { %v139_v7 = vpop.f32.mrb[1].mxu0 }
  0xda   :  { %v1424_v8 = vpack.c.bf16 %v1350_v6, %v139_v7 }
  0xdc   :  { %v1353_v9 = vpop.f32.mrb[2].mxu0  ;;  %1425 = vmatprep.subr.bf16.mxu1 %v1424_v8 }
  0xdd   :  { %v149_v10 = vpop.f32.mrb[3].mxu0  ;;  %1427 = vmatpush3.bf16.msra.mxu1 %v1424_v8 }
  0xde   :  { %v1428_v11 = vpack.c.bf16 %v1353_v9, %v149_v10 }
  0xe0   :  { %1429 = vmatprep.subr.bf16.mxu1 %v1428_v11 }
  0xe1   :  { %1431 = vmatpush3.bf16.msra.mxu1 %v1428_v11 }
  0xe4   :  { %1363 = vmatmul.mubr.msk.f32.vlgmr.msra.gmra.mrb[0].mxu1 %vm165_vm1, %v1646_v12 }
  0xe5   :  { %1365 = vmatprep.mubr.msk.f32.mxu1 %vm165_vm1, %v1651_v13 }
  0xe8   :  { %1366 = vmatmul.mubr.msk.f32.gmra.mrb[2].mxu1 %vm165_vm1, %v1660_v14 }
  0xe9   :  { %1390 = vmatprep.mubr.msk.f32.mxu1 %vm165_vm1, %v1639_v5 }
 0x1b7   :  { %v1364_v16 = vpop.f32.mrb[0].mxu1 }
 0x1b8   :  { %v250_v18 = vadd.f32 %v1364_v16, %v1278_v15  ;;  %v244_v19 = vpop.f32.mrb[1].mxu1 }
 0x1b9   :  { %v245_v21 = vadd.f32 %v1278_v15, %v244_v19 }
 0x1ba   :  { %v268_v22 = vmul.f32 %v1672_v17, %v250_v18 }
 0x1bb   :  { %v267_v23 = vmul.f32 %v1677_v20, %v245_v21  ;;  %v1367_v24 = vpop.f32.mrb[2].mxu1 }
 0x1bc   :  { %v1686_v26 = vmax.f32 %v268_v22, 0.0  ;;  %v260_v27 = vadd.f32 %v1367_v24, %v1278_v15  ;;  %v254_v28 = vpop.f32.mrb[3].mxu1 }
 0x1bd   :  { %v1693_v30 = vmax.f32 %v267_v23, 0.0  ;;  %v255_v31 = vadd.f32 %v1278_v15, %v254_v28 }
 0x1be   :  { %v270_v32 = vmul.f32 %v1684_v25, %v260_v27  ;;  %364 = vrot.lane.b32.xlu1 %v1686_v26, %s1535_s26  ;;  %v289_v39 = vmul.f32 %v1686_v26, %v1686_v26  ;;  %v279_v43 = vsel %vm275_vm2, %v1686_v26, 0.0 }
 0x1bf   :  { %v269_v33 = vmul.f32 %v1691_v29, %v255_v31  ;;  %362 = vrot.lane.b32.xlu0 %v1693_v30, %s1535_s26  ;;  %v288_v36 = vmul.f32 %v1693_v30, %v1693_v30  ;;  %v276_v40 = vsel %vm275_vm2, %v1693_v30, 0.0 }
 0x1c0   :  { %v1701_v34 = vmax.f32 %v270_v32, 0.0  ;;  %v295_v47 = vsel %vm275_vm2, %v289_v39, 0.0 }
 0x1c1   :  { %v1703_v35 = vmax.f32 %v269_v33, 0.0  ;;  %v292_v45 = vsel %vm275_vm2, %v288_v36, 0.0 }
 0x1c2   :  { %368 = vrot.lane.b32.xlu1 %v1701_v34, %s1535_s26  ;;  %v291_v38 = vmul.f32 %v1701_v34, %v1701_v34  ;;  %v285_v42 = vsel %vm275_vm2, %v1701_v34, 0.0 }
 0x1c3   :  { %390 = vrot.lane.b32.xlu0 %v288_v36, %s1535_s26  ;;  %v290_v37 = vmul.f32 %v1703_v35, %v1703_v35  ;;  %v282_v41 = vsel %vm275_vm2, %v1703_v35, 0.0  ;;  %v320_v36 = vld [vmem:[%s2003_s5] sm:$0xff] }
 0x1c4   :  { %v301_v44 = vsel %vm275_vm2, %v291_v38, 0.0 }
 0x1c5   :  { %v298_v46 = vsel %vm275_vm2, %v290_v37, 0.0 }
 0x1c6   :  { %394 = vrot.lane.b32.xlu1 %v290_v37, %s1535_s26 }
 0x1c7   :  { %366 = vrot.lane.b32.xlu0 %v1703_v35, %s1535_s26 }
 0x1ca   :  { %396 = vrot.lane.b32.xlu1 %v291_v38, %s1535_s26 }
 0x1cb   :  { %392 = vrot.lane.b32.xlu0 %v289_v39, %s1535_s26  ;;  %v321_v39 = vld [vmem:[%s2003_s5 + $0x8] sm:$0xff] }
 0x1ea   :  { %277 = vadd.xlane.f32.xlu0 %v276_v40 }
 0x1ee   :  { %283 = vadd.xlane.f32.xlu1 %v282_v41  ;;  %286 = vadd.xlane.f32.xlu0 %v285_v42 }
 0x1f2   :  { %280 = vadd.xlane.f32.xlu1 %v279_v43  ;;  %302 = vadd.xlane.f32.xlu0 %v301_v44 }
 0x1f6   :  { %293 = vadd.xlane.f32.xlu1 %v292_v45  ;;  %299 = vadd.xlane.f32.xlu0 %v298_v46 }
 0x1fa   :  { %296 = vadd.xlane.f32.xlu1 %v295_v47 }
 0x230   :  { %v365_v49 = vpop.permute.xlu1 %364 }
 0x231   :  { %v363_v50 = vpop.permute.xlu0 %362  ;;  %v377_v51 = vsel %vm275_vm2, %v365_v49, 0.0 }
 0x232   :  { %378 = vadd.xlane.f32.xlu1 %v377_v51  ;;  %v374_v52 = vsel %vm275_vm2, %v363_v50, 0.0 }
 0x233   :  { %375 = vadd.xlane.f32.xlu0 %v374_v52 }
 0x234   :  { %v369_v53 = vpop.permute.xlu1 %368 }
 0x235   :  { %v391_v54 = vpop.permute.xlu0 %390  ;;  %v383_v55 = vsel %vm275_vm2, %v369_v53, 0.0 }
 0x236   :  { %v402_v56 = vsel %vm275_vm2, %v391_v54, 0.0 }
 0x237   :  { %403 = vadd.xlane.f32.xlu1 %v402_v56  ;;  %384 = vadd.xlane.f32.xlu0 %v383_v55 }
 0x238   :  { %v395_v57 = vpop.permute.xlu1 %394 }
 0x239   :  { %v367_v58 = vpop.permute.xlu0 %366  ;;  %v408_v62 = vsel %vm275_vm2, %v395_v57, 0.0 }
 0x23a   :  { %v380_v59 = vsel %vm275_vm2, %v367_v58, 0.0 }
 0x23b   :  { %381 = vadd.xlane.f32.xlu0 %v380_v59 }
 0x23c   :  { %v397_v63 = vpop.permute.xlu1 %396 }
 0x23d   :  { %v393_v60 = vpop.permute.xlu0 %392  ;;  %v411_v0 = vsel %vm275_vm2, %v397_v63, 0.0 }
 0x23e   :  { %v405_v61 = vsel %vm275_vm2, %v393_v60, 0.0 }
 0x23f   :  { %406 = vadd.xlane.f32.xlu1 %v405_v61  ;;  %409 = vadd.xlane.f32.xlu0 %v408_v62 }
 0x243   :  { %412 = vadd.xlane.f32.xlu0 %v411_v0 }
 0x277   :  { %v278_v2 = vpop.xlane.xlu0 %277 }
 0x27b   :  { %v284_v3 = vpop.xlane.xlu1 %283  ;;  %v287_v4 = vpop.xlane.xlu0 %286 }
 0x27c   :  { %v304_v6 = vadd.f32 %v284_v3, %v278_v2 }
 0x27e   :  { %v308_v9 = vmul.f32 0.03125, %v304_v6 }
 0x27f   :  { %v281_v7 = vpop.xlane.xlu1 %280  ;;  %v303_v8 = vpop.xlane.xlu0 %302 }
 0x280   :  { %v305_v10 = vadd.f32 %v287_v4, %v281_v7  ;;  %v312_v18 = vmul.f32 %v308_v9, %v308_v9 }
 0x282   :  { %v309_v19 = vmul.f32 0.03125, %v305_v10 }
 0x283   :  { %v294_v11 = vpop.xlane.xlu1 %293  ;;  %v300_v15 = vpop.xlane.xlu0 %299 }
 0x284   :  { %v306_v16 = vadd.f32 %v300_v15, %v294_v11  ;;  %v313_v27 = vmul.f32 %v309_v19, %v309_v19  ;;  %v325_v11 = vld [vmem:[%s2004_s6 + $0x8] sm:$0xff] }
 0x286   :  { %v310_v21 = vmul.f32 0.03125, %v306_v16 }
 0x287   :  { %v297_v22 = vpop.xlane.xlu1 %296 }
 0x288   :  { %v314_v23 = vsub.f32 %v310_v21, %v312_v18  ;;  %v307_v24 = vadd.f32 %v303_v8, %v297_v22  ;;  %v468_v18 = vld [vmem:[%s2005_s7] sm:$0xff] }
 0x28a   :  { %v316_v28 = vadd.f32 1e-05, %v314_v23  ;;  %v311_v31 = vmul.f32 0.03125, %v307_v24  ;;  %v470_v24 = vld [vmem:[%s2005_s7 + $0x10] sm:$0xff] }
 0x28c   :  { %1487 = vrsqrt.f32 %v316_v28  ;;  %v315_v32 = vsub.f32 %v311_v31, %v313_v27  ;;  %v471_v27 = vld [vmem:[%s2005_s7 + $0x18] sm:$0xff] }
 0x28d   :  { %v1436_v28 = vpack.c.bf16 %v471_v27, %v470_v24 }
 0x28e   :  { %v317_v33 = vadd.f32 1e-05, %v315_v32 }
 0x290   :  { %1489 = vrsqrt.f32 %v317_v33 }
 0x296   :  { %v1488_v37 = vpop.eup %1487 }
 0x297   :  { %v322_v38 = vmul.f32 %v1488_v37, %v320_v36 }
 0x299   :  { %332 = vperm.xlu1 %1474, %v322_v38   ;;  %v326_v40 = vmul.f32 %v322_v38, %v308_v9  ;;  %v324_v9 = vld [vmem:[%s2004_s6] sm:$0xff] }
 0x29a   :  { %v1490_v41 = vpop.eup %1489 }
 0x29b   :  { %v323_v42 = vmul.f32 %v1490_v41, %v321_v39  ;;  %v328_v10 = vsub.f32 %v324_v9, %v326_v40 }
 0x29d   :  { %337 = vperm.xlu1 %1474, %v323_v42   ;;  %v327_v43 = vmul.f32 %v323_v42, %v309_v19  ;;  %v469_v19 = vld [vmem:[%s2005_s7 + $0x8] sm:$0xff] }
 0x29e   :  { %v1432_v21 = vpack.c.bf16 %v469_v19, %v468_v18 }
 0x29f   :  { %v329_v15 = vsub.f32 %v325_v11, %v327_v43 }
 0x2a0   :  { %1433 = vmatprep.subr.bf16.mxu0 %v1432_v21 }
 0x2a1   :  { %1476 = vset.pattern.permute.xlu1 %v1537_v1  ;;  %1435 = vmatpush3.bf16.msra.mxu0 %v1432_v21 }
 0x2a2   :  { %1437 = vmatprep.subr.bf16.mxu0 %v1436_v28 }
 0x2a5   :  { %1439 = vmatpush3.bf16.msra.mxu0 %v1436_v28 }
 0x2bf   :  { %v379_v46 = vpop.xlane.xlu1 %378 }
 0x2c0   :  { %v376_v44 = vpop.xlane.xlu0 %375 }
 0x2c4   :  { %v385_v45 = vpop.xlane.xlu0 %384  ;;  %v404_v52 = vpop.xlane.xlu1 %403 }
 0x2c5   :  { %v415_v50 = vadd.f32 %v385_v45, %v379_v46 }
 0x2c7   :  { %v419_v55 = vmul.f32 0.03125, %v415_v50 }
 0x2c8   :  { %v382_v47 = vpop.xlane.xlu0 %381 }
 0x2c9   :  { %v414_v49 = vadd.f32 %v382_v47, %v376_v44  ;;  %v423_v62 = vmul.f32 %v419_v55, %v419_v55 }
 0x2cb   :  { %v418_v51 = vmul.f32 0.03125, %v414_v49 }
 0x2cc   :  { %v410_v53 = vpop.xlane.xlu0 %409  ;;  %v407_v58 = vpop.xlane.xlu1 %406 }
 0x2cd   :  { %v416_v54 = vadd.f32 %v410_v53, %v404_v52  ;;  %v422_v56 = vmul.f32 %v418_v51, %v418_v51 }
 0x2cf   :  { %v420_v57 = vmul.f32 0.03125, %v416_v54 }
 0x2d0   :  { %v413_v59 = vpop.xlane.xlu0 %412 }
 0x2d1   :  { %v424_v60 = vsub.f32 %v420_v57, %v422_v56  ;;  %v417_v61 = vadd.f32 %v413_v59, %v407_v58 }
 0x2d3   :  { %v426_v63 = vadd.f32 1e-05, %v424_v60  ;;  %v421_v0 = vmul.f32 0.03125, %v417_v61 }
 0x2d5   :  { %1491 = vrsqrt.f32 %v426_v63  ;;  %v425_v2 = vsub.f32 %v421_v0, %v423_v62 }
 0x2d7   :  { %v427_v3 = vadd.f32 1e-05, %v425_v2  ;;  %v1287_v2 = vld [vmem:[%s2006_s8] ss:$0 sm:$0xff] }
 0x2d9   :  { %1493 = vrsqrt.f32 %v427_v3 }
 0x2df   :  { %v1492_v4 = vpop.eup %1491 }
 0x2e0   :  { %v430_v6 = vmul.f32 %v1492_v4, %v320_v36 }
 0x2e2   :  { %438 = vperm.xlu0 %1475, %v430_v6   ;;  %v432_v16 = vmul.f32 %v430_v6, %v418_v51 }
 0x2e3   :  { %v1494_v7 = vpop.eup %1493 }
 0x2e4   :  { %v431_v8 = vmul.f32 %v1494_v7, %v321_v39  ;;  %v434_v22 = vsub.f32 %v324_v9, %v432_v16 }
 0x2e6   :  { %443 = vperm.xlu1 %1476, %v431_v8   ;;  %1480 = vset.pattern.permute.xlu0 %v1536_v48  ;;  %v433_v23 = vmul.f32 %v431_v8, %v419_v55 }
 0x2e8   :  { %v435_v31 = vsub.f32 %v325_v11, %v433_v23 }
 0x2ea   :  { %1477 = vset.pattern.permute.xlu1 %v1536_v48 }
 0x2eb   :  { %346 = vperm.xlu1 %1477, %v328_v10  }
 0x2ef   :  { %351 = vperm.xlu1 %1477, %v329_v15  }
 0x2f3   :  { %1478 = vset.pattern.permute.xlu1 %v1537_v1 }
 0x2f4   :  { %452 = vperm.xlu1 %1478, %v434_v22  }
 0x2f8   :  { %457 = vperm.xlu1 %1478, %v435_v31  }
 0x2fc   :  { %1479 = vset.pattern.permute.xlu1 %v1536_v48 }
 0x318   :  { %v333_v32 = vpop.permute.xlu1 %332 }
 0x319   :  { %v340_v40 = vmul.f32 %v333_v32, %v1693_v30  ;;  %v342_v50 = vmul.f32 %v333_v32, %v1703_v35 }
 0x31c   :  { %v338_v33 = vpop.permute.xlu1 %337 }
 0x31d   :  { %v341_v46 = vmul.f32 %v338_v33, %v1686_v26  ;;  %v343_v56 = vmul.f32 %v338_v33, %v1701_v34 }
 0x361   :  { %v439_v39 = vpop.permute.xlu0 %438 }
 0x362   :  { %v446_v41 = vmul.f32 %v439_v39, %v1693_v30  ;;  %v448_v45 = vmul.f32 %v439_v39, %v1703_v35 }
 0x365   :  { %v444_v36 = vpop.permute.xlu1 %443 }
 0x366   :  { %v447_v47 = vmul.f32 %v444_v36, %v1686_v26  ;;  %v449_v53 = vmul.f32 %v444_v36, %v1701_v34 }
 0x36a   :  { %v347_v37 = vpop.permute.xlu1 %346 }
 0x36b   :  { %v354_v43 = vadd.f32 %v347_v37, %v340_v40  ;;  %v356_v55 = vadd.f32 %v347_v37, %v342_v50 }
 0x36e   :  { %v352_v38 = vpop.permute.xlu1 %351 }
 0x36f   :  { %v355_v30 = vadd.f32 %v352_v38, %v341_v46  ;;  %v357_v59 = vadd.f32 %v352_v38, %v343_v56 }
 0x373   :  { %v453_v42 = vpop.permute.xlu1 %452 }
 0x374   :  { %v460_v44 = vadd.f32 %v453_v42, %v446_v41  ;;  %v462_v51 = vadd.f32 %v453_v42, %v448_v45 }
 0x376   :  { %v464_v49 = vsel %vm275_vm2, %v354_v43, %v460_v44  ;;  %v466_v26 = vsel %vm275_vm2, %v356_v55, %v462_v51 }
 0x377   :  { %v458_v52 = vpop.permute.xlu1 %457  ;;  %1376 = vmatprep.mubr.msk.f32.mxu0 %vm165_vm1, %v464_v49 }
 0x378   :  { %v461_v54 = vadd.f32 %v458_v52, %v447_v47  ;;  %v463_v57 = vadd.f32 %v458_v52, %v449_v53 }
 0x37a   :  { %v465_v58 = vsel %vm275_vm2, %v355_v30, %v461_v54  ;;  %v467_v35 = vsel %vm275_vm2, %v357_v59, %v463_v57 }
 0x37b   :  { %1377 = vmatmul.mubr.msk.f32.vlgmr.msra.gmra.mrb[4].mxu0 %vm165_vm1, %v465_v58 }
 0x37c   :  { %1379 = vmatprep.mubr.msk.f32.mxu0 %vm165_vm1, %v466_v26 }
 0x37f   :  { %1380 = vmatmul.mubr.msk.f32.gmra.mrb[6].mxu0 %vm165_vm1, %v467_v35 }
 0x44e   :  { %v1378_v60 = vpop.f32.mrb[4].mxu0 }
 0x44f   :  { %v550_v61 = vpop.f32.mrb[5].mxu0 }
 0x450   :  { %v1440_v62 = vpack.c.bf16 %v1378_v60, %v550_v61 }
 0x452   :  { %v1381_v63 = vpop.f32.mrb[6].mxu0  ;;  %1441 = vmatprep.subr.bf16.mxu1 %v1440_v62 }
 0x453   :  { %v560_v34 = vpop.f32.mrb[7].mxu0  ;;  %1443 = vmatpush3.bf16.msra.mxu1 %v1440_v62 }
 0x454   :  { %v1444_v0 = vpack.c.bf16 %v1381_v63, %v560_v34 }
 0x456   :  { %1445 = vmatprep.subr.bf16.mxu1 %v1444_v0 }
 0x457   :  { %1447 = vmatpush3.bf16.msra.mxu1 %v1444_v0 }
 0x45a   :  { %1391 = vmatmul.mubr.msk.f32.vlgmr.msra.gmra.mrb[4].mxu1 %vm165_vm1, %v1646_v12 }
 0x45b   :  { %1393 = vmatprep.mubr.msk.f32.mxu1 %vm165_vm1, %v1651_v13 }
 0x45e   :  { %1394 = vmatmul.mubr.msk.f32.gmra.mrb[6].mxu1 %vm165_vm1, %v1660_v14 }
 0x45f   :  { %1421 = vmatprep.mubr.msk.f32.mxu1 %vm165_vm1, %v1651_v13 }
 0x52d   :  { %v1392_v3 = vpop.f32.mrb[4].mxu1 }
 0x52e   :  { %v648_v4 = vadd.f32 %v1392_v3, %v1287_v2  ;;  %v642_v6 = vpop.f32.mrb[5].mxu1 }
 0x52f   :  { %v643_v7 = vadd.f32 %v1287_v2, %v642_v6 }
 0x530   :  { %v662_v8 = vmul.f32 %v648_v4, %v1672_v17 }
 0x531   :  { %v661_v9 = vmul.f32 %v643_v7, %v1677_v20  ;;  %v1395_v10 = vpop.f32.mrb[6].mxu1 }
 0x532   :  { %v1801_v11 = vmax.f32 %v662_v8, 0.0  ;;  %v658_v15 = vadd.f32 %v1395_v10, %v1287_v2  ;;  %v652_v16 = vpop.f32.mrb[7].mxu1 }
 0x533   :  { %v1803_v18 = vmax.f32 %v661_v9, 0.0  ;;  %v653_v13 = vadd.f32 %v1287_v2, %v652_v16 }
 0x534   :  { %v664_v19 = vmul.f32 %v658_v15, %v1684_v25  ;;  %757 = vrot.lane.b32.xlu0 %v1801_v11, %s1535_s26  ;;  %v682_v24 = vmul.f32 %v1801_v11, %v1801_v11  ;;  %v672_v39 = vsel %vm275_vm2, %v1801_v11, 0.0 }
 0x535   :  { %755 = vrot.lane.b32.xlu1 %v1803_v18, %s1535_s26  ;;  %v681_v21 = vmul.f32 %v1803_v18, %v1803_v18  ;;  %v663_v23 = vmul.f32 %v653_v13, %v1691_v29  ;;  %v669_v32 = vsel %vm275_vm2, %v1803_v18, 0.0 }
 0x536   :  { %v1812_v22 = vmax.f32 %v664_v19, 0.0  ;;  %v688_v41 = vsel %vm275_vm2, %v682_v24, 0.0 }
 0x537   :  { %v1820_v27 = vmax.f32 %v663_v23, 0.0  ;;  %v685_v40 = vsel %vm275_vm2, %v681_v21, 0.0 }
 0x538   :  { %783 = vrot.lane.b32.xlu0 %v681_v21, %s1535_s26  ;;  %v684_v31 = vmul.f32 %v1812_v22, %v1812_v22  ;;  %v678_v33 = vsel %vm275_vm2, %v1812_v22, 0.0  ;;  %v713_v21 = vld [vmem:[%s2007_s9] sm:$0xff] }
 0x539   :  { %761 = vrot.lane.b32.xlu1 %v1812_v22, %s1535_s26  ;;  %v683_v28 = vmul.f32 %v1820_v27, %v1820_v27  ;;  %v675_v38 = vsel %vm275_vm2, %v1820_v27, 0.0 }
 0x53a   :  { %v694_v36 = vsel %vm275_vm2, %v684_v31, 0.0 }
 0x53b   :  { %v691_v37 = vsel %vm275_vm2, %v683_v28, 0.0 }
 0x53c   :  { %785 = vrot.lane.b32.xlu0 %v682_v24, %s1535_s26 }
 0x53d   :  { %759 = vrot.lane.b32.xlu1 %v1820_v27, %s1535_s26 }
 0x541   :  { %787 = vrot.lane.b32.xlu1 %v683_v28, %s1535_s26  ;;  %v714_v28 = vld [vmem:[%s2007_s9 + $0x8] sm:$0xff] }
 0x545   :  { %789 = vrot.lane.b32.xlu1 %v684_v31, %s1535_s26  ;;  %v717_v31 = vld [vmem:[%s2008_s10] sm:$0xff] }
 0x55b   :  { %670 = vadd.xlane.f32.xlu0 %v669_v32 }
 0x55f   :  { %679 = vadd.xlane.f32.xlu0 %v678_v33 }
 0x563   :  { %695 = vadd.xlane.f32.xlu0 %v694_v36 }
 0x567   :  { %692 = vadd.xlane.f32.xlu0 %v691_v37 }
 0x569   :  { %676 = vadd.xlane.f32.xlu1 %v675_v38 }
 0x56d   :  { %673 = vadd.xlane.f32.xlu1 %v672_v39 }
 0x571   :  { %686 = vadd.xlane.f32.xlu1 %v685_v40 }
 0x575   :  { %689 = vadd.xlane.f32.xlu1 %v688_v41 }
 0x5a6   :  { %v758_v42 = vpop.permute.xlu0 %757 }
 0x5a7   :  { %v756_v43 = vpop.permute.xlu1 %755  ;;  %v770_v44 = vsel %vm275_vm2, %v758_v42, 0.0 }
 0x5a8   :  { %771 = vadd.xlane.f32.xlu1 %v770_v44  ;;  %v767_v45 = vsel %vm275_vm2, %v756_v43, 0.0 }
 0x5a9   :  { %768 = vadd.xlane.f32.xlu0 %v767_v45 }
 0x5aa   :  { %v784_v46 = vpop.permute.xlu0 %783 }
 0x5ab   :  { %v762_v47 = vpop.permute.xlu1 %761  ;;  %v795_v49 = vsel %vm275_vm2, %v784_v46, 0.0 }
 0x5ac   :  { %796 = vadd.xlane.f32.xlu1 %v795_v49  ;;  %v776_v50 = vsel %vm275_vm2, %v762_v47, 0.0 }
 0x5ad   :  { %777 = vadd.xlane.f32.xlu0 %v776_v50 }
 0x5ae   :  { %v786_v51 = vpop.permute.xlu0 %785 }
 0x5af   :  { %v760_v52 = vpop.permute.xlu1 %759  ;;  %v798_v53 = vsel %vm275_vm2, %v786_v51, 0.0 }
 0x5b0   :  { %799 = vadd.xlane.f32.xlu1 %v798_v53  ;;  %v773_v30 = vsel %vm275_vm2, %v760_v52, 0.0 }
 0x5b1   :  { %774 = vadd.xlane.f32.xlu0 %v773_v30 }
 0x5b3   :  { %v788_v54 = vpop.permute.xlu1 %787 }
 0x5b4   :  { %v801_v55 = vsel %vm275_vm2, %v788_v54, 0.0 }
 0x5b5   :  { %802 = vadd.xlane.f32.xlu0 %v801_v55 }
 0x5b7   :  { %v790_v56 = vpop.permute.xlu1 %789 }
 0x5b8   :  { %v804_v57 = vsel %vm275_vm2, %v790_v56, 0.0 }
 0x5b9   :  { %805 = vadd.xlane.f32.xlu0 %v804_v57 }
 0x5e8   :  { %v671_v58 = vpop.xlane.xlu0 %670 }
 0x5ec   :  { %v680_v26 = vpop.xlane.xlu0 %679 }
 0x5f0   :  { %v696_v35 = vpop.xlane.xlu0 %695 }
 0x5f4   :  { %v693_v34 = vpop.xlane.xlu0 %692 }
 0x5f6   :  { %v677_v59 = vpop.xlane.xlu1 %676 }
 0x5f7   :  { %v697_v60 = vadd.f32 %v677_v59, %v671_v58 }
 0x5f9   :  { %v701_v62 = vmul.f32 0.03125, %v697_v60 }
 0x5fa   :  { %v674_v61 = vpop.xlane.xlu1 %673 }
 0x5fb   :  { %v698_v63 = vadd.f32 %v680_v26, %v674_v61  ;;  %v705_v3 = vmul.f32 %v701_v62, %v701_v62 }
 0x5fd   :  { %v702_v4 = vmul.f32 0.03125, %v698_v63 }
 0x5fe   :  { %v687_v0 = vpop.xlane.xlu1 %686 }
 0x5ff   :  { %v699_v2 = vadd.f32 %v693_v34, %v687_v0  ;;  %v706_v10 = vmul.f32 %v702_v4, %v702_v4  ;;  %v718_v0 = vld [vmem:[%s2008_s10 + $0x8] sm:$0xff] }
 0x601   :  { %v703_v6 = vmul.f32 0.03125, %v699_v2  ;;  %v861_v2 = vld [vmem:[%s2009_s11] sm:$0xff] }
 0x602   :  { %v690_v7 = vpop.xlane.xlu1 %689 }
 0x603   :  { %v707_v8 = vsub.f32 %v703_v6, %v705_v3  ;;  %v700_v9 = vadd.f32 %v696_v35, %v690_v7  ;;  %v862_v3 = vld [vmem:[%s2009_s11 + $0x8] sm:$0xff] }
 0x604   :  { %v1448_v7 = vpack.c.bf16 %v862_v3, %v861_v2 }
 0x605   :  { %v709_v15 = vadd.f32 1e-05, %v707_v8  ;;  %v704_v16 = vmul.f32 0.03125, %v700_v9  ;;  %v863_v8 = vld [vmem:[%s2009_s11 + $0x10] sm:$0xff]  ;;  %v864_v9 = vld [vmem:[%s2009_s11 + $0x18] sm:$0xff] }
 0x606   :  { %1449 = vmatprep.subr.bf16.mxu0 %v1448_v7 }
 0x607   :  { %1495 = vrsqrt.f32 %v709_v15  ;;  %v708_v13 = vsub.f32 %v704_v16, %v706_v10  ;;  %1451 = vmatpush3.bf16.msra.mxu0 %v1448_v7  ;;  %v1452_v10 = vpack.c.bf16 %v864_v9, %v863_v8 }
 0x609   :  { %v710_v19 = vadd.f32 1e-05, %v708_v13  ;;  %1453 = vmatprep.subr.bf16.mxu0 %v1452_v10 }
 0x60b   :  { %1497 = vrsqrt.f32 %v710_v19  ;;  %1455 = vmatpush3.bf16.msra.mxu0 %v1452_v10 }
 0x611   :  { %v1496_v23 = vpop.eup %1495 }
 0x612   :  { %v715_v24 = vmul.f32 %v1496_v23, %v713_v21 }
 0x614   :  { %v719_v32 = vmul.f32 %v715_v24, %v701_v62 }
 0x615   :  { %v1498_v33 = vpop.eup %1497 }
 0x616   :  { %v716_v36 = vmul.f32 %v1498_v33, %v714_v28  ;;  %v721_v37 = vsub.f32 %v717_v31, %v719_v32 }
 0x618   :  { %730 = vperm.xlu1 %1479, %v716_v36   ;;  %739 = vperm.xlu0 %1480, %v721_v37   ;;  %v720_v38 = vmul.f32 %v716_v36, %v702_v4 }
 0x61a   :  { %v722_v15 = vsub.f32 %v718_v0, %v720_v38 }
 0x61c   :  { %725 = vperm.xlu1 %1479, %v715_v24   ;;  %1482 = vset.pattern.permute.xlu0 %v1537_v1 }
 0x620   :  { %1481 = vset.pattern.permute.xlu1 %v1537_v1 }
 0x635   :  { %v772_v40 = vpop.xlane.xlu1 %771 }
 0x636   :  { %v769_v39 = vpop.xlane.xlu0 %768 }
 0x639   :  { %v797_v44 = vpop.xlane.xlu1 %796 }
 0x63a   :  { %v778_v41 = vpop.xlane.xlu0 %777 }
 0x63b   :  { %v808_v45 = vadd.f32 %v778_v41, %v772_v40 }
 0x63d   :  { %v812_v50 = vmul.f32 0.03125, %v808_v45  ;;  %v800_v53 = vpop.xlane.xlu1 %799 }
 0x63e   :  { %v775_v42 = vpop.xlane.xlu0 %774 }
 0x63f   :  { %v807_v43 = vadd.f32 %v775_v42, %v769_v39  ;;  %v816_v56 = vmul.f32 %v812_v50, %v812_v50 }
 0x641   :  { %v811_v46 = vmul.f32 0.03125, %v807_v43 }
 0x642   :  { %v803_v47 = vpop.xlane.xlu0 %802 }
 0x643   :  { %v809_v49 = vadd.f32 %v803_v47, %v797_v44  ;;  %v815_v51 = vmul.f32 %v811_v46, %v811_v46 }
 0x645   :  { %v813_v52 = vmul.f32 0.03125, %v809_v49 }
 0x646   :  { %v806_v30 = vpop.xlane.xlu0 %805 }
 0x647   :  { %v817_v54 = vsub.f32 %v813_v52, %v815_v51  ;;  %v810_v55 = vadd.f32 %v806_v30, %v800_v53 }
 0x649   :  { %v819_v57 = vadd.f32 1e-05, %v817_v54  ;;  %v814_v58 = vmul.f32 0.03125, %v810_v55 }
 0x64b   :  { %1499 = vrsqrt.f32 %v819_v57  ;;  %v818_v26 = vsub.f32 %v814_v58, %v816_v56 }
 0x64d   :  { %v820_v59 = vadd.f32 1e-05, %v818_v26 }
 0x64f   :  { %1501 = vrsqrt.f32 %v820_v59 }
 0x655   :  { %v1500_v35 = vpop.eup %1499 }
 0x656   :  { %v823_v60 = vmul.f32 %v1500_v35, %v713_v21 }
 0x658   :  { %831 = vperm.xlu0 %1482, %v823_v60   ;;  %v825_v63 = vmul.f32 %v823_v60, %v811_v46 }
 0x659   :  { %v1502_v61 = vpop.eup %1501 }
 0x65a   :  { %v824_v62 = vmul.f32 %v1502_v61, %v714_v28  ;;  %v827_v4 = vsub.f32 %v717_v31, %v825_v63 }
 0x65c   :  { %836 = vperm.xlu1 %1481, %v824_v62   ;;  %v826_v34 = vmul.f32 %v824_v62, %v812_v50 }
 0x65e   :  { %v828_v6 = vsub.f32 %v718_v0, %v826_v34 }
 0x660   :  { %845 = vperm.xlu1 %1481, %v827_v4   ;;  %850 = vperm.xlu0 %1482, %v828_v6  }
 0x664   :  { %1483 = vset.pattern.permute.xlu1 %v1536_v48  ;;  %1484 = vset.pattern.permute.xlu0 %v1536_v48 }
 0x665   :  { %744 = vperm.xlu1 %1483, %v722_v15  }
 0x697   :  { %v731_v16 = vpop.permute.xlu1 %730  ;;  %v740_v13 = vpop.permute.xlu0 %739 }
 0x698   :  { %v734_v39 = vmul.f32 %v731_v16, %v1801_v11 }
 0x69b   :  { %v726_v19 = vpop.permute.xlu1 %725 }
 0x69c   :  { %v733_v24 = vmul.f32 %v726_v19, %v1803_v18  ;;  %v735_v36 = vmul.f32 %v726_v19, %v1820_v27 }
 0x69e   :  { %v747_v32 = vadd.f32 %v740_v13, %v733_v24  ;;  %v749_v45 = vadd.f32 %v740_v13, %v735_v36 }
 0x6d7   :  { %v832_v21 = vpop.permute.xlu0 %831 }
 0x6d8   :  { %v839_v28 = vmul.f32 %v832_v21, %v1803_v18  ;;  %v841_v37 = vmul.f32 %v832_v21, %v1820_v27  ;;  %v736_v18 = vmul.f32 %v731_v16, %v1812_v22 }
 0x6db   :  { %v837_v23 = vpop.permute.xlu1 %836 }
 0x6dc   :  { %v840_v40 = vmul.f32 %v837_v23, %v1801_v11  ;;  %v842_v46 = vmul.f32 %v837_v23, %v1812_v22 }
 0x6df   :  { %v846_v31 = vpop.permute.xlu1 %845  ;;  %v851_v38 = vpop.permute.xlu0 %850 }
 0x6e0   :  { %v853_v33 = vadd.f32 %v846_v31, %v839_v28  ;;  %v855_v41 = vadd.f32 %v846_v31, %v841_v37  ;;  %v854_v43 = vadd.f32 %v851_v38, %v840_v40  ;;  %v856_v50 = vadd.f32 %v851_v38, %v842_v46 }
 0x6e2   :  { %v857_v48 = vsel %vm275_vm2, %v747_v32, %v853_v33  ;;  %v859_v49 = vsel %vm275_vm2, %v749_v45, %v855_v41 }
 0x6e3   :  { %1404 = vmatprep.mubr.msk.f32.mxu0 %vm165_vm1, %v857_v48 }
 0x6e4   :  { %v745_v42 = vpop.permute.xlu1 %744 }
 0x6e5   :  { %v748_v44 = vadd.f32 %v745_v42, %v734_v39  ;;  %v750_v47 = vadd.f32 %v745_v42, %v736_v18 }
 0x6e7   :  { %v858_v27 = vsel %vm275_vm2, %v748_v44, %v854_v43  ;;  %v860_v11 = vsel %vm275_vm2, %v750_v47, %v856_v50 }
 0x6e8   :  { %1405 = vmatmul.mubr.msk.f32.vlgmr.msra.gmra.mrb[8].mxu0 %vm165_vm1, %v858_v27 }
 0x6e9   :  { %1407 = vmatprep.mubr.msk.f32.mxu0 %vm165_vm1, %v859_v49 }
 0x6ec   :  { %1408 = vmatmul.mubr.msk.f32.gmra.mrb[10].mxu0 %vm165_vm1, %v860_v11 }
 0x6ed   :  { %1418 = vmatprep.mubr.msk.f32.mxu0 %vm165_vm1, %v1639_v5  ;;  %v1296_v5 = vld [vmem:[%s2010_s12] ss:$0 sm:$0xff] }
 0x7bb   :  { %v1406_v51 = vpop.f32.mrb[8].mxu0 }
 0x7bc   :  { %v943_v52 = vpop.f32.mrb[9].mxu0 }
 0x7bd   :  { %v1456_v22 = vpack.c.bf16 %v1406_v51, %v943_v52 }
 0x7bf   :  { %v1409_v53 = vpop.f32.mrb[10].mxu0  ;;  %1457 = vmatprep.subr.bf16.mxu0 %v1456_v22  ;;  %1464 = vmatprep.subr.bf16.mxu1 %v1456_v22 }
 0x7c0   :  { %v953_v30 = vpop.f32.mrb[11].mxu0  ;;  %1459 = vmatpush3.bf16.msra.mxu0 %v1456_v22  ;;  %1466 = vmatpush3.bf16.msra.mxu1 %v1456_v22 }
 0x7c1   :  { %v1460_v54 = vpack.c.bf16 %v1409_v53, %v953_v30 }
 0x7c3   :  { %1461 = vmatprep.subr.bf16.mxu0 %v1460_v54  ;;  %1465 = vmatprep.subr.bf16.mxu1 %v1460_v54 }
 0x7c4   :  { %1463 = vmatpush3.bf16.msra.mxu0 %v1460_v54  ;;  %1467 = vmatpush3.bf16.msra.mxu1 %v1460_v54 }
 0x7c7   :  { %1419 = vmatmul.mubr.msk.f32.vlgmr.msra.gmra.mrb[12].mxu0 %vm165_vm1, %v1646_v12  ;;  %1422 = vmatmul.mubr.msk.f32.vlgmr.msra.gmra.mrb[8].mxu1 %vm165_vm1, %v1660_v14 }
 0x89a   :  { %v1420_v55 = vpop.f32.mrb[12].mxu0  ;;  %v1423_v56 = vpop.f32.mrb[8].mxu1 }
 0x89b   :  { %v1041_v57 = vadd.f32 %v1420_v55, %v1296_v5  ;;  %v1051_v58 = vadd.f32 %v1423_v56, %v1296_v5  ;;  %v1045_v26 = vpop.f32.mrb[9].mxu1  ;;  %v1035_v59 = vpop.f32.mrb[13].mxu0 }
 0x89c   :  { %v1046_v35 = vadd.f32 %v1296_v5, %v1045_v26 }
 0x89d   :  { %v1055_v60 = vmul.f32 %v1041_v57, %v1672_v17  ;;  %v1057_v61 = vmul.f32 %v1051_v58, %v1684_v25  ;;  %v1036_v17 = vadd.f32 %v1296_v5, %v1035_v59  ;;  %v1107_v58 = vld [vmem:[%s2011_s13 + $0x8] sm:$0xff] }
 0x89e   :  { %v1056_v14 = vmul.f32 %v1046_v35, %v1691_v29  ;;  %v1106_v35 = vld [vmem:[%s2011_s13] sm:$0xff]  ;;  %s1538_s13 = smov [#allocation2]  }
 0x89f   :  { %v1906_v62 = vmax.f32 %v1055_v60, 0.0  ;;  %v1908_v12 = vmax.f32 %v1057_v61, 0.0  ;;  %v1054_v34 = vmul.f32 %v1036_v17, %v1677_v20  ;;  %v1111_v17 = vld [vmem:[%s2012_s14 + $0x8] sm:$0xff] }
 0x8a0   :  { %v1915_v63 = vmax.f32 %v1056_v14, 0.0 }
 0x8a1   :  { %1154 = vrot.lane.b32.xlu0 %v1908_v12, %s1535_s26  ;;  %1150 = vrot.lane.b32.xlu1 %v1906_v62, %s1535_s26  ;;  %v1065_v25 = vsel %vm275_vm2, %v1906_v62, 0.0  ;;  %v1071_v29 = vsel %vm275_vm2, %v1908_v12, 0.0  ;;  %v1924_v0 = vmax.f32 %v1054_v34, 0.0  ;;  %v1075_v20 = vmul.f32 %v1906_v62, %v1906_v62 }
 0x8a2   :  { %v1068_v3 = vsel %vm275_vm2, %v1915_v63, 0.0  ;;  %v1076_v6 = vmul.f32 %v1915_v63, %v1915_v63  ;;  %v1077_v8 = vmul.f32 %v1908_v12, %v1908_v12 }
 0x8a3   :  { %v1062_v2 = vsel %vm275_vm2, %v1924_v0, 0.0  ;;  %v1074_v4 = vmul.f32 %v1924_v0, %v1924_v0  ;;  %v1081_v7 = vsel %vm275_vm2, %v1075_v20, 0.0 }
 0x8a4   :  { %v1087_v9 = vsel %vm275_vm2, %v1077_v8, 0.0  ;;  %v1084_v15 = vsel %vm275_vm2, %v1076_v6, 0.0 }
 0x8a5   :  { %1152 = vrot.lane.b32.xlu1 %v1915_v63, %s1535_s26  ;;  %v1078_v10 = vsel %vm275_vm2, %v1074_v4, 0.0 }
 0x8c0   :  { %1066 = vadd.xlane.f32.xlu0 %v1065_v25  ;;  %v1110_v25 = vld [vmem:[%s2012_s14] sm:$0xff]  ;;  %s1263_s14 = sshll.u32 %s1538_s13, 4  ;;  %s1264_s14 = int_to_ptr.vmem [resolvable:$true] %s1263_s14 }
 0x8c1   :  { %s1511_s7 = scalar_lea.vmem %s1264_s14, 512  ;;  %p1516_p1 = scmp.lt.s32.totalorder %s1264_s14, %s1264_s14 }
 0x8c2   :  { %p1512_p0 = scmp.ne.s32.totalorder %s1264_s14, %s1511_s7  ;;  %p1517_p2 = scmp.lt.s32.totalorder %s1511_s7, %s1511_s7 }
 0x8c4   :  { %1072 = vadd.xlane.f32.xlu0 %v1071_v29  ;;  %p1518_p3 = por %p1517_p2, %p1516_p1 }
 0x8c6   :  { %p1519_p4 = pnand %p1518_p3, %p1512_p0 }
 0x8c9   :  { %1063 = vadd.xlane.f32.xlu1 %v1062_v2 }
 0x8cd   :  { %1069 = vadd.xlane.f32.xlu1 %v1068_v3 }
 0x8da   :  { %1148 = vrot.lane.b32.xlu0 %v1924_v0, %s1535_s26 }
 0x8de   :  { %1178 = vrot.lane.b32.xlu0 %v1075_v20, %s1535_s26  ;;  %1176 = vrot.lane.b32.xlu1 %v1074_v4, %s1535_s26 }
 0x8e2   :  { %1180 = vrot.lane.b32.xlu1 %v1076_v6, %s1535_s26 }
 0x8fd   :  { %1082 = vadd.xlane.f32.xlu0 %v1081_v7 }
 0x901   :  { %1088 = vadd.xlane.f32.xlu0 %v1087_v9 }
 0x906   :  { %1079 = vadd.xlane.f32.xlu1 %v1078_v10 }
 0x90a   :  { %1085 = vadd.xlane.f32.xlu1 %v1084_v15 }
 0x913   :  { %v1155_v16 = vpop.permute.xlu0 %1154  ;;  %v1151_v19 = vpop.permute.xlu1 %1150 }
 0x914   :  { %v1169_v13 = vsel %vm275_vm2, %v1155_v16, 0.0  ;;  %v1163_v21 = vsel %vm275_vm2, %v1151_v19, 0.0 }
 0x915   :  { %1170 = vadd.xlane.f32.xlu1 %v1169_v13 }
 0x917   :  { %1182 = vrot.lane.b32.xlu0 %v1077_v8, %s1535_s26  ;;  %v1153_v23 = vpop.permute.xlu1 %1152 }
 0x918   :  { %v1166_v24 = vsel %vm275_vm2, %v1153_v23, 0.0 }
 0x936   :  { %1164 = vadd.xlane.f32.xlu0 %v1163_v21 }
 0x93a   :  { %1167 = vadd.xlane.f32.xlu0 %v1166_v24 }
 0x94d   :  { %v1067_v28 = vpop.xlane.xlu0 %1066 }
 0x951   :  { %v1073_v31 = vpop.xlane.xlu0 %1072 }
 0x952   :  { %v1091_v18 = vadd.f32 %v1073_v31, %v1067_v28 }
 0x954   :  { %v1095_v44 = vmul.f32 0.03125, %v1091_v18 }
 0x955   :  { %v1149_v32 = vpop.permute.xlu0 %1148 }
 0x956   :  { %v1064_v33 = vpop.xlane.xlu1 %1063  ;;  %v1160_v36 = vsel %vm275_vm2, %v1149_v32, 0.0  ;;  %v1099_v47 = vmul.f32 %v1095_v44, %v1095_v44 }
 0x957   :  { %1161 = vadd.xlane.f32.xlu1 %v1160_v36 }
 0x959   :  { %v1179_v37 = vpop.permute.xlu0 %1178 }
 0x95a   :  { %v1070_v38 = vpop.xlane.xlu1 %1069  ;;  %v1191_v48 = vsel %vm275_vm2, %v1179_v37, 0.0 }
 0x95b   :  { %1192 = vadd.xlane.f32.xlu1 %v1191_v48  ;;  %v1090_v49 = vadd.f32 %v1070_v38, %v1064_v33 }
 0x95d   :  { %v1094_v53 = vmul.f32 0.03125, %v1090_v49 }
 0x95e   :  { %v1177_v39 = vpop.permute.xlu1 %1176 }
 0x95f   :  { %v1188_v40 = vsel %vm275_vm2, %v1177_v39, 0.0  ;;  %v1098_v5 = vmul.f32 %v1094_v53, %v1094_v53 }
 0x960   :  { %1189 = vadd.xlane.f32.xlu0 %v1188_v40 }
 0x962   :  { %v1181_v41 = vpop.permute.xlu1 %1180 }
 0x963   :  { %v1194_v42 = vsel %vm275_vm2, %v1181_v41, 0.0 }
 0x964   :  { %1195 = vadd.xlane.f32.xlu0 %v1194_v42 }
 0x98a   :  { %v1083_v43 = vpop.xlane.xlu0 %1082 }
 0x98e   :  { %v1089_v45 = vpop.xlane.xlu0 %1088 }
 0x98f   :  { %v1093_v46 = vadd.f32 %v1089_v45, %v1083_v43 }
 0x991   :  { %v1097_v27 = vmul.f32 0.03125, %v1093_v46 }
 0x992   :  { %v1183_v50 = vpop.permute.xlu0 %1182 }
 0x993   :  { %v1101_v11 = vsub.f32 %v1097_v27, %v1099_v47  ;;  %v1080_v51 = vpop.xlane.xlu1 %1079  ;;  %v1197_v52 = vsel %vm275_vm2, %v1183_v50, 0.0 }
 0x994   :  { %1198 = vadd.xlane.f32.xlu1 %v1197_v52 }
 0x995   :  { %v1103_v22 = vadd.f32 1e-05, %v1101_v11 }
 0x997   :  { %1503 = vrsqrt.f32 %v1103_v22  ;;  %v1086_v30 = vpop.xlane.xlu1 %1085 }
 0x998   :  { %v1092_v54 = vadd.f32 %v1086_v30, %v1080_v51 }
 0x99a   :  { %v1096_v55 = vmul.f32 0.03125, %v1092_v54 }
 0x99c   :  { %v1100_v56 = vsub.f32 %v1096_v55, %v1098_v5 }
 0x99e   :  { %v1102_v57 = vadd.f32 1e-05, %v1100_v56 }
 0x9a0   :  { %1505 = vrsqrt.f32 %v1102_v57 }
 0x9a1   :  { %v1504_v26 = vpop.eup %1503 }
 0x9a2   :  { %v1109_v59 = vmul.f32 %v1504_v26, %v1107_v58  ;;  %v1171_v20 = vpop.xlane.xlu1 %1170 }
 0x9a4   :  { %v1113_v61 = vmul.f32 %v1109_v59, %v1095_v44 }
 0x9a5   :  { %1123 = vperm.xlu1 %1483, %v1109_v59  }
 0x9a6   :  { %v1115_v29 = vsub.f32 %v1111_v17, %v1113_v61 }
 0x9aa   :  { %v1506_v60 = vpop.eup %1505 }
 0x9ab   :  { %v1108_v14 = vmul.f32 %v1506_v60, %v1106_v35 }
 0x9ad   :  { %1118 = vperm.xlu1 %1483, %v1108_v14   ;;  %v1112_v34 = vmul.f32 %v1108_v14, %v1094_v53 }
 0x9af   :  { %v1114_v2 = vsub.f32 %v1110_v25, %v1112_v34 }
 0x9b1   :  { %1137 = vperm.xlu1 %1483, %v1115_v29   ;;  %1132 = vperm.xlu0 %1484, %v1114_v2  }
 0x9b5   :  { %1485 = vset.pattern.permute.xlu0 %v1537_v1  ;;  %1486 = vset.pattern.permute.xlu1 %v1537_v1 }
 0x9c3   :  { %v1165_v3 = vpop.xlane.xlu0 %1164 }
 0x9c4   :  { %v1201_v28 = vadd.f32 %v1171_v20, %v1165_v3 }
 0x9c6   :  { %v1205_v1 = vmul.f32 0.03125, %v1201_v28 }
 0x9c7   :  { %v1168_v4 = vpop.xlane.xlu0 %1167 }
 0x9c8   :  { %v1209_v36 = vmul.f32 %v1205_v1, %v1205_v1 }
 0x9e4   :  { %v1162_v6 = vpop.xlane.xlu1 %1161 }
 0x9e5   :  { %v1200_v7 = vadd.f32 %v1168_v4, %v1162_v6 }
 0x9e7   :  { %v1204_v9 = vmul.f32 0.03125, %v1200_v7 }
 0x9e8   :  { %v1193_v31 = vpop.xlane.xlu1 %1192 }
 0x9e9   :  { %v1208_v16 = vmul.f32 %v1204_v9, %v1204_v9 }
 0x9ed   :  { %v1190_v8 = vpop.xlane.xlu0 %1189 }
 0x9f1   :  { %v1196_v10 = vpop.xlane.xlu0 %1195 }
 0x9f2   :  { %v1202_v15 = vadd.f32 %v1196_v10, %v1190_v8 }
 0x9f4   :  { %v1206_v13 = vmul.f32 0.03125, %v1202_v15 }
 0x9f6   :  { %v1210_v19 = vsub.f32 %v1206_v13, %v1208_v16 }
 0x9f8   :  { %v1212_v21 = vadd.f32 1e-05, %v1210_v19 }
 0x9fa   :  { %1507 = vrsqrt.f32 %v1212_v21 }
 0xa04   :  { %v1508_v23 = vpop.eup %1507 }
 0xa05   :  { %v1216_v24 = vmul.f32 %v1508_v23, %v1106_v35 }
 0xa07   :  { %1224 = vperm.xlu0 %1485, %v1216_v24   ;;  %v1218_v40 = vmul.f32 %v1216_v24, %v1204_v9 }
 0xa09   :  { %v1220_v42 = vsub.f32 %v1110_v25, %v1218_v40 }
 0xa21   :  { %v1199_v32 = vpop.xlane.xlu1 %1198 }
 0xa22   :  { %v1203_v33 = vadd.f32 %v1199_v32, %v1193_v31 }
 0xa24   :  { %v1207_v37 = vmul.f32 0.03125, %v1203_v33 }
 0xa25   :  { %v1124_v44 = vpop.permute.xlu1 %1123 }
 0xa26   :  { %v1211_v38 = vsub.f32 %v1207_v37, %v1209_v36  ;;  %v1127_v55 = vmul.f32 %v1124_v44, %v1906_v62  ;;  %v1129_v56 = vmul.f32 %v1124_v44, %v1908_v12 }
 0xa28   :  { %v1213_v48 = vadd.f32 1e-05, %v1211_v38 }
 0xa2a   :  { %1509 = vrsqrt.f32 %v1213_v48 }
 0xa2c   :  { %v1119_v45 = vpop.permute.xlu1 %1118 }
 0xa2d   :  { %v1126_v50 = vmul.f32 %v1119_v45, %v1924_v0  ;;  %v1128_v11 = vmul.f32 %v1119_v45, %v1915_v63 }
 0xa30   :  { %v1133_v46 = vpop.permute.xlu0 %1132  ;;  %v1138_v47 = vpop.permute.xlu1 %1137 }
 0xa31   :  { %v1140_v53 = vadd.f32 %v1133_v46, %v1126_v50  ;;  %v1142_v30 = vadd.f32 %v1133_v46, %v1128_v11  ;;  %v1141_v59 = vadd.f32 %v1138_v47, %v1127_v55  ;;  %v1143_v35 = vadd.f32 %v1138_v47, %v1129_v56 }
 0xa34   :  { %v1510_v39 = vpop.eup %1509 }
 0xa35   :  { %v1217_v41 = vmul.f32 %v1510_v39, %v1107_v58 }
 0xa37   :  { %1229 = vperm.xlu1 %1486, %v1217_v41   ;;  %v1219_v18 = vmul.f32 %v1217_v41, %v1205_v1 }
 0xa39   :  { %v1221_v43 = vsub.f32 %v1111_v17, %v1219_v18 }
 0xa3b   :  { %1238 = vperm.xlu1 %1486, %v1220_v42  }
 0xa3f   :  { %1243 = vperm.xlu1 %1486, %v1221_v43  }
 0xa86   :  { %v1225_v27 = vpop.permute.xlu0 %1224 }
 0xa87   :  { %v1232_v51 = vmul.f32 %v1225_v27, %v1924_v0  ;;  %v1234_v52 = vmul.f32 %v1225_v27, %v1915_v63 }
 0xab6   :  { %v1230_v49 = vpop.permute.xlu1 %1229 }
 0xab7   :  { %v1233_v57 = vmul.f32 %v1230_v49, %v1906_v62  ;;  %v1235_v58 = vmul.f32 %v1230_v49, %v1908_v12 }
 0xaba   :  { %v1239_v22 = vpop.permute.xlu1 %1238 }
 0xabb   :  { %v1246_v54 = vadd.f32 %v1239_v22, %v1232_v51  ;;  %v1248_v5 = vadd.f32 %v1239_v22, %v1234_v52 }
 0xabd   :  { %v1250_v26 = vsel %vm275_vm2, %v1140_v53, %v1246_v54  ;;  %v1252_v0 = vsel %vm275_vm2, %v1142_v30, %v1248_v5 }
 0xabe   :  { %1254 = vst.msk [vmem:[#allocation2] sm:$0xff] %vm165_vm1, %v1250_v26  ;;  %1256 = vst.msk [vmem:[#allocation2 + $0x10] sm:$0xff] %vm165_vm1, %v1252_v0  ;;  %v1244_v63 = vpop.permute.xlu1 %1243 }
 0xabf   :  { %v1247_v60 = vadd.f32 %v1244_v63, %v1233_v57  ;;  %v1249_v61 = vadd.f32 %v1244_v63, %v1235_v58 }
 0xac1   :  { %v1251_v14 = vsel %vm275_vm2, %v1141_v59, %v1247_v60  ;;  %v1253_v62 = vsel %vm275_vm2, %v1143_v35, %v1249_v61 }
 0xac2   :  { %1255 = vst.msk [vmem:[#allocation2 + $0x8] sm:$0xff] %vm165_vm1, %v1251_v14  ;;  %1257 = vst.msk [vmem:[#allocation2 + $0x18] sm:$0xff] %vm165_vm1, %v1253_v62 }
 0xac3   :  { %1522 = shalt.err (!%p1519_p4)
}
 0xac4   :  { %s1523_s4 = scalar_lea.hbm %s2013_s15, 512 }
 0xac5   :  { %p1524_p5 = scmp.ne.s32.totalorder %s2013_s15, %s1523_s4  ;;  %p1527_p6 = scmp.lt.u32.totalorder %s1523_s4, %s2013_s15 }
 0xac7   :  { %p1529_p7 = pnand %p1527_p6, %p1524_p5 }
 0xac9   :  { %1532 = shalt.err (!%p1529_p7)
}
 0xaca   :  { %s1539_s9 = smov 128   ;;  %s1540_s27 = smov 8  }
 0xacb   :  { %1269 = dma.vmem_to_hbm [thread:$0]  %s1264_s14, 512, %s2013_s15, [#allocation3], %s1539_s9, %s1539_s9, %s1540_s27  }
 0xacc   :  { %1533 = dma.done.wait [#allocation3], 512  }
 0xacd   :  { %1534 = vsyncadd [#allocation3], 4294966784 }
 0xace   :  { %1273 = vsyncpa [#allocation3], 1 }

</bundles_post_ra>
